<compile_context>
chip_gen: v6e
topology: v6e:2x2x1
jax: 0.10.0
libtpu: 0.0.40
codegen_flags: <defaults>
</compile_context>

<pallas_src>
import functools

import jax
import jax.numpy as jnp
from jax import lax
from jax.experimental import pallas as pl
from jax.experimental.pallas import tpu as pltpu


# ---------------------------------------------------------------------------
# Generation-aware VMEM budget (v5e/v6e: 128 MiB physical, v7x: 64 MiB).
# ---------------------------------------------------------------------------
def _vmem_budget_bytes():
    try:
        cap = int(pltpu.get_tpu_info().vmem_capacity_bytes)
    except Exception:
        cap = 64 * 1024 * 1024          # conservative (v7x-sized) fallback
    return max(32 * 1024 * 1024, (cap * 3) // 4)   # ~25% headroom for compiler scratch


# ---------------------------------------------------------------------------
# Tile-size helpers
# ---------------------------------------------------------------------------
def _pick_tile(dim, target, align):
    """Largest tile <= target that divides `dim` and is a multiple of `align`;
    falls back to the full dim (always a legal block size)."""
    if dim <= target:
        return dim
    t = (target // align) * align
    while t >= align:
        if dim % t == 0:
            return t
        t -= align
    return dim


def _seq_tile_candidates(dim, cap, align):
    """Descending list of legal tile sizes for a sequence axis."""
    if dim <= cap:
        return [dim]
    cands = []
    t = (cap // align) * align
    while t >= align:
        if dim % t == 0:
            cands.append(t)
        t -= align
    return cands if cands else [dim]


def _head_tile_candidates(H, D):
    """Head-group tiles th s.t. the (th, D) input blocks and (tq, th*D) lane-dense
    output blocks are legal: th | H, and th == H or (th % 8 == 0 and th*D % 128 == 0)."""
    cands = []
    for t in range(H, 0, -1):
        if H % t:
            continue
        if t == H or (t % 8 == 0 and (t * D) % 128 == 0):
            cands.append(t)
    return cands


def _full_attn_vmem_bytes(th, tq, Sk, D, in_bytes, w_bytes):
    qkv = 2 * (tq + 2 * Sk) * th * D * in_bytes      # double-buffered q + k + v blocks
    ctx = 2 * tq * th * D * in_bytes                 # double-buffered context block
    wts = 2 * th * tq * Sk * w_bytes                 # double-buffered weights block
    tmp = 4 * tq * Sk * 4                            # f32 score/exp temporaries (per head)
    return qkv + ctx + wts + tmp + 2 * Sk * 4


def _choose_full_attn_tiles(H, Sq, Sk, D, in_bytes, w_bytes, budget, q_cap=512):
    fits, fallback = [], None
    for th in _head_tile_candidates(H, D):
        for tq in _seq_tile_candidates(Sq, q_cap, 8):
            need = _full_attn_vmem_bytes(th, tq, Sk, D, in_bytes, w_bytes)
            if need <= budget:
                fits.append((tq, th))
            if fallback is None or need < fallback[2]:
                fallback = (tq, th, need)
    if fits:
        tq, th = max(fits)        # maximize tq (total K/V HBM traffic ~ 1/tq), then th
    else:
        tq, th, _ = fallback      # nothing fits the budget: use the smallest footprint
    return th, tq


def _flash_attn_vmem_bytes(th, tq, tkv, D, in_bytes):
    qkv = 2 * (tq + 2 * tkv) * th * D * in_bytes
    ctx = 2 * tq * th * D * in_bytes
    scratch = th * tq * (D + 2) * 4                  # m, l, acc scratch (f32)
    tmp = 5 * tq * tkv * 4
    return qkv + ctx + scratch + tmp + 2 * tkv * 4


def _choose_flash_attn_tiles(H, Sq, Sk, D, in_bytes, budget, q_cap=512, kv_cap=1024):
    fits, fallback = [], None
    for th in _head_tile_candidates(H, D):
        for tq in _seq_tile_candidates(Sq, q_cap, 8):
            for tkv in _seq_tile_candidates(Sk, kv_cap, 128):
                need = _flash_attn_vmem_bytes(th, tq, tkv, D, in_bytes)
                if need <= budget:
                    fits.append((tq, tkv, th))
                if fallback is None or need < fallback[3]:
                    fallback = (tq, tkv, th, need)
    if fits:
        tq, tkv, th = max(fits)
    else:
        tq, tkv, th, _ = fallback
    return th, tq, tkv


# ---------------------------------------------------------------------------
# Kernel 1: tiled dense / linear layer   y = x @ W + b
#   x: (M, K), W: (K, N), b: (1, N) -> y: (M, N)
#   grid = (M/tm, N/tn, K/tk); f32 accumulator in VMEM; K axis is the reduction.
# ---------------------------------------------------------------------------
def _linear_kernel(x_ref, w_ref, b_ref, o_ref, acc_ref):
    @pl.when(pl.program_id(2) == 0)
    def _init():
        acc_ref[...] = jnp.zeros_like(acc_ref)

    acc_ref[...] += jnp.dot(x_ref[...], w_ref[...],
                            preferred_element_type=jnp.float32)

    @pl.when(pl.program_id(2) == pl.num_programs(2) - 1)
    def _finalize():
        o_ref[...] = (acc_ref[...] + b_ref[...]).astype(o_ref.dtype)


def _choose_linear_tiles(M, N, K, in_bytes, out_bytes, budget):
    tk = _pick_tile(K, 512, 128)
    for target in (1024, 768, 512, 384, 256, 128):
        tm = _pick_tile(M, target, 8)
        tn = _pick_tile(N, target, 128)
        need = (2 * (tm * tk + tk * tn) * in_bytes      # double-buffered x, w blocks
                + 2 * tm * tn * out_bytes               # double-buffered output block
                + tm * tn * 4 + 2 * tn * 4)             # f32 accumulator + bias row
        if need <= budget:
            return tm, tn, tk
    return _pick_tile(M, 128, 8), _pick_tile(N, 128, 128), tk


def linear_pallas(x2d, w, b, *, out_dtype=None):
    M, K = x2d.shape
    K2, N = w.shape
    assert K == K2
    out_dtype = out_dtype if out_dtype is not None else x2d.dtype
    budget = _vmem_budget_bytes()
    tm, tn, tk = _choose_linear_tiles(M, N, K, jnp.dtype(x2d.dtype).itemsize,
                                      jnp.dtype(out_dtype).itemsize, budget)
    grid = (M // tm, N // tn, K // tk)
    b2d = b.reshape(1, N).astype(jnp.float32)

    return pl.pallas_call(
        _linear_kernel,
        out_shape=jax.ShapeDtypeStruct((M, N), out_dtype),
        grid_spec=pltpu.PrefetchScalarGridSpec(
            num_scalar_prefetch=0,
            grid=grid,
            in_specs=[
                pl.BlockSpec((tm, tk), lambda i, j, k: (i, k)),
                pl.BlockSpec((tk, tn), lambda i, j, k: (k, j)),
                pl.BlockSpec((1, tn), lambda i, j, k: (0, j)),
            ],
            out_specs=pl.BlockSpec((tm, tn), lambda i, j, k: (i, j)),
            scratch_shapes=[pltpu.VMEM((tm, tn), jnp.float32)],
        ),
        compiler_params=pltpu.CompilerParams(
            dimension_semantics=("parallel", "parallel", "arbitrary"),
            vmem_limit_bytes=budget,
        ),
    )(x2d, w, b2d)


# ---------------------------------------------------------------------------
# Kernel 2a: attention with full score rows (weights are materialized & returned).
#   One grid step = (head group, batch element, Q tile). Per head: QK^T via
#   lax.dot_general on the last axis (no transpose), additive mask bias, stable
#   f32 softmax, AV matmul; heads concatenated in-kernel for a lane-dense store.
# ---------------------------------------------------------------------------
def _attn_weights_kernel(*refs, has_bias, scale, n_heads_blk):
    idx = 0
    q_ref = refs[idx]; idx += 1
    k_ref = refs[idx]; idx += 1
    v_ref = refs[idx]; idx += 1
    b_ref = None
    if has_bias:
        b_ref = refs[idx]; idx += 1
    ctx_ref = refs[idx]; idx += 1
    w_ref = refs[idx]

    bias_row = b_ref[0, 0] if has_bias else None            # (1, Sk) f32
    ctx_cols = []
    for h in range(n_heads_blk):
        qh = q_ref[0, :, 0, h, :]                            # (tq, D)
        kh = k_ref[0, :, 0, h, :]                            # (Sk, D)
        vh = v_ref[0, :, 0, h, :]                            # (Sk, D)
        qh = qh * jnp.asarray(scale, qh.dtype)               # scale q (tq*D), not scores (tq*Sk)
        s = lax.dot_general(qh, kh, (((1,), (1,)), ((), ())),
                            preferred_element_type=jnp.float32)     # (tq, Sk), no transpose
        if has_bias:
            s = s + bias_row                                 # additive mask bias
        s_max = jnp.max(s, axis=-1, keepdims=True)
        e = jnp.exp(s - s_max)
        den = jnp.sum(e, axis=-1, keepdims=True)
        inv = pl.reciprocal(den, approx=True)                # EUP slot (nearly free)
        inv = inv * (2.0 - den * inv)                        # one Newton step -> f32 accuracy
        attn = e * inv
        w_ref[0, h] = attn.astype(w_ref.dtype)
        # Dropout(attn) is identity in eval mode / p=0.
        ctx_cols.append(jnp.dot(attn.astype(vh.dtype), vh,
                                preferred_element_type=jnp.float32))  # (tq, D) f32
    # Heads concatenated in-kernel -> single lane-dense (tq, th*D) store.
    ctx_ref[0] = jnp.concatenate(ctx_cols, axis=-1).astype(ctx_ref.dtype)


# ---------------------------------------------------------------------------
# Kernel 2b: flash / KV-tiled online-softmax attention (no weights output).
#   Extra 'arbitrary' KV grid axis; running m / l / acc scratch in VMEM so the
#   footprint is independent of Sk.
# ---------------------------------------------------------------------------
def _attn_flash_kernel(*refs, has_bias, scale, n_heads_blk):
    idx = 0
    q_ref = refs[idx]; idx += 1
    k_ref = refs[idx]; idx += 1
    v_ref = refs[idx]; idx += 1
    b_ref = None
    if has_bias:
        b_ref = refs[idx]; idx += 1
    ctx_ref = refs[idx]; idx += 1
    m_sc = refs[idx]; idx += 1
    l_sc = refs[idx]; idx += 1
    acc_sc = refs[idx]

    kv = pl.program_id(3)

    @pl.when(kv == 0)
    def _init():
        m_sc[...] = jnp.full_like(m_sc, -jnp.inf)
        l_sc[...] = jnp.zeros_like(l_sc)
        acc_sc[...] = jnp.zeros_like(acc_sc)

    bias_row = b_ref[0, 0] if has_bias else None             # (1, tkv) f32
    for h in range(n_heads_blk):
        qh = q_ref[0, :, 0, h, :]                             # (tq, D)
        kh = k_ref[0, :, 0, h, :]                             # (tkv, D)
        vh = v_ref[0, :, 0, h, :]
        qh = qh * jnp.asarray(scale, qh.dtype)
        s = lax.dot_general(qh, kh, (((1,), (1,)), ((), ())),
                            preferred_element_type=jnp.float32)      # (tq, tkv)
        if has_bias:
            s = s + bias_row
        m_prev = m_sc[h]                                      # (tq, 1)
        m_new = jnp.maximum(m_prev, jnp.max(s, axis=-1, keepdims=True))
        alpha = jnp.exp(m_prev - m_new)
        p = jnp.exp(s - m_new)
        l_sc[h] = alpha * l_sc[h] + jnp.sum(p, axis=-1, keepdims=True)
        acc_sc[h] = alpha * acc_sc[h] + jnp.dot(p.astype(vh.dtype), vh,
                                                preferred_element_type=jnp.float32)
        m_sc[h] = m_new

    @pl.when(kv == pl.num_programs(3) - 1)
    def _finalize():
        ctx_cols = []
        for h in range(n_heads_blk):
            l = l_sc[h]
            inv = pl.reciprocal(l, approx=True)
            inv = inv * (2.0 - l * inv)
            ctx_cols.append(acc_sc[h] * inv)                  # (tq, D) f32
        ctx_ref[0] = jnp.concatenate(ctx_cols, axis=-1).astype(ctx_ref.dtype)


def attention_pallas(q5, k5, v5, *, slots, bias=None, return_weights=True,
                     weights_dtype=None):
    """q5/k5/v5: (B, S, n_slots, H, D) projection outputs (views of the (B*S, n_slots*hid)
    linear outputs - no wrapper-side head transpose). `slots` are the static q/k/v slot
    indices along axis 2. bias: optional (B,1,1,Sk) additive f32 mask bias (-1e10 at masked
    positions). Returns the context lane-dense as (B, Sq, H*D) (heads already concatenated)
    and, optionally, the (B, H, Sq, Sk) attention weights."""
    B, Sq, _, H, D = q5.shape
    Sk = k5.shape[1]
    hid = H * D
    cdtype = q5.dtype
    in_bytes = jnp.dtype(cdtype).itemsize
    wdtype = cdtype if weights_dtype is None else weights_dtype
    has_bias = bias is not None
    budget = _vmem_budget_bytes()
    scale = 1.0 / float(D) ** 0.5
    sq_, sk_, sv_ = slots

    ctx_shape = jax.ShapeDtypeStruct((B, Sq, hid), cdtype)
    inputs = [q5, k5, v5]

    if return_weights:
        # Full-row kernel: the (B,H,Sq,Sk) weights must be materialized anyway.
        th, tq = _choose_full_attn_tiles(H, Sq, Sk, D, in_bytes,
                                         jnp.dtype(wdtype).itemsize, budget)
        nh, nq = H // th, Sq // tq
        grid = (nh, B, nq)      # head-group axis first: megacore extent even at B=1-2
        in_specs = [
            pl.BlockSpec((1, tq, 1, th, D), lambda h, b, i, s=sq_: (b, i, s, h, 0)),
            pl.BlockSpec((1, Sk, 1, th, D), lambda h, b, i, s=sk_: (b, 0, s, h, 0)),
            pl.BlockSpec((1, Sk, 1, th, D), lambda h, b, i, s=sv_: (b, 0, s, h, 0)),
        ]
        if has_bias:
            in_specs.append(pl.BlockSpec((1, 1, 1, Sk), lambda h, b, i: (b, 0, 0, 0)))
            inputs.append(bias)
        out_specs = (
            pl.BlockSpec((1, tq, th * D), lambda h, b, i: (b, i, h)),        # lane-dense ctx
            pl.BlockSpec((1, th, tq, Sk), lambda h, b, i: (b, h, i, 0)),
        )
        out_shape = (ctx_shape, jax.ShapeDtypeStruct((B, H, Sq, Sk), wdtype))
        kernel = functools.partial(_attn_weights_kernel, has_bias=has_bias,
                                   scale=scale, n_heads_blk=th)
        ctx, attn_w = pl.pallas_call(
            kernel, out_shape=out_shape, grid=grid,
            in_specs=in_specs, out_specs=out_specs,
            compiler_params=pltpu.CompilerParams(
                dimension_semantics=("parallel", "parallel", "parallel"),
                vmem_limit_bytes=budget),
        )(*inputs)
        return ctx, attn_w

    # Flash / online-softmax kernel: KV-tiled, VMEM independent of Sk.
    th, tq, tkv = _choose_flash_attn_tiles(H, Sq, Sk, D, in_bytes, budget)
    nh, nq, nkv = H // th, Sq // tq, Sk // tkv
    grid = (nh, B, nq, nkv)
    in_specs = [
        pl.BlockSpec((1, tq, 1, th, D), lambda h, b, i, j, s=sq_: (b, i, s, h, 0)),
        pl.BlockSpec((1, tkv, 1, th, D), lambda h, b, i, j, s=sk_: (b, j, s, h, 0)),
        pl.BlockSpec((1, tkv, 1, th, D), lambda h, b, i, j, s=sv_: (b, j, s, h, 0)),
    ]
    if has_bias:
        in_specs.append(pl.BlockSpec((1, 1, 1, tkv), lambda h, b, i, j: (b, 0, 0, j)))
        inputs.append(bias)
    out_specs = pl.BlockSpec((1, tq, th * D), lambda h, b, i, j: (b, i, h))
    kernel = functools.partial(_attn_flash_kernel, has_bias=has_bias,
                               scale=scale, n_heads_blk=th)
    ctx = pl.pallas_call(
        kernel, out_shape=ctx_shape, grid=grid,
        in_specs=in_specs, out_specs=out_specs,
        scratch_shapes=[pltpu.VMEM((th, tq, 1), jnp.float32),
                        pltpu.VMEM((th, tq, 1), jnp.float32),
                        pltpu.VMEM((th, tq, D), jnp.float32)],
        compiler_params=pltpu.CompilerParams(
            dimension_semantics=("parallel", "parallel", "parallel", "arbitrary"),
            vmem_limit_bytes=budget),
    )(*inputs)
    return ctx, None


# ---------------------------------------------------------------------------
# MultiHeadAttention forward (glue in plain JAX, hot paths in Pallas)
# ---------------------------------------------------------------------------
def prepare_params(params, compute_dtype=jnp.float32):
    """One-time parameter prep: concatenated QKV weights + compute-dtype casts, so they
    are not re-concatenated / re-cast on every forward call."""
    cd = compute_dtype
    w_qkv = jnp.concatenate([params["wq"], params["wk"], params["wv"]], axis=1)
    b_qkv = jnp.concatenate([params["bq"], params["bk"], params["bv"]], axis=0)
    return {
        "w_qkv": w_qkv.astype(cd), "b_qkv": b_qkv.astype(jnp.float32),
        "wq": params["wq"].astype(cd), "bq": params["bq"].astype(jnp.float32),
        "wk": params["wk"].astype(cd), "bk": params["bk"].astype(jnp.float32),
        "wv": params["wv"].astype(cd), "bv": params["bv"].astype(jnp.float32),
        "wfc": params["wfc"].astype(cd), "bfc": params["bfc"].astype(jnp.float32),
    }


def multi_head_attention(q, k, v, params, n_heads, mask=None, *,
                         compute_dtype=jnp.float32, return_weights=True,
                         weights_dtype=None):
    B, Sq, hid = q.shape
    D = hid // n_heads
    cd = compute_dtype
    p = params if "w_qkv" in params else prepare_params(params, cd)

    # torch.masked_fill(mask == 0, -1e10) as a precomputed additive bias (kernel does one add).
    bias = None
    if mask is not None:
        bias = jnp.where(mask == 0, jnp.float32(-1.0e10), jnp.float32(0.0)).astype(jnp.float32)

    if q is k and k is v:
        # Self-attention: fused QKV projection -> activations read from HBM once.
        # NOTE: relies on object identity; equal-but-distinct arrays take the 3-matmul path.
        y = linear_pallas(q.reshape(B * Sq, hid).astype(cd), p["w_qkv"].astype(cd),
                          p["b_qkv"], out_dtype=cd)
        y5 = y.reshape(B, Sq, 3, n_heads, D)          # view, no HBM transpose
        ctx, attn_w = attention_pallas(y5, y5, y5, slots=(0, 1, 2), bias=bias,
                                       return_weights=return_weights,
                                       weights_dtype=weights_dtype)
    else:
        def project(x, w, b):
            S = x.shape[1]
            yy = linear_pallas(x.reshape(B * S, hid).astype(cd), w.astype(cd), b,
                               out_dtype=cd)
            return yy.reshape(B, S, 1, n_heads, D)    # view, no HBM transpose

        q5 = project(q, p["wq"], p["bq"])
        k5 = project(k, p["wk"], p["bk"])
        v5 = project(v, p["wv"], p["bv"])
        ctx, attn_w = attention_pallas(q5, k5, v5, slots=(0, 0, 0), bias=bias,
                                       return_weights=return_weights,
                                       weights_dtype=weights_dtype)

    # ctx is already (B, Sq, hid) with heads concatenated in-kernel (lane-dense store);
    # no transpose/reshape pass before the output projection.
    out = linear_pallas(ctx.reshape(B * Sq, hid), p["wfc"].astype(cd), p["bfc"],
                        out_dtype=jnp.float32)
    return out.reshape(B, Sq, hid), attn_w


# ---------------------------------------------------------------------------
# Pure-JAX reference (mirrors the PyTorch forward) for sanity checks
# ---------------------------------------------------------------------------
def reference_mha(q, k, v, params, n_heads, mask=None):
    B, Sq, hid = q.shape
    head_dim = hid // n_heads

    def proj(x, w, b):
        y = x @ w + b
        return jnp.transpose(y.reshape(B, -1, n_heads, head_dim), (0, 2, 1, 3))

    qh = proj(q, params["wq"], params["bq"])
    kh = proj(k, params["wk"], params["bk"])
    vh = proj(v, params["wv"], params["bv"])
    scores = jnp.einsum("bhqd,bhkd->bhqk", qh, kh) / jnp.sqrt(jnp.float32(head_dim))
    if mask is not None:
        scores = jnp.where(mask == 0, -1.0e10, scores)
    attn = jax.nn.softmax(scores, axis=-1)
    x = jnp.einsum("bhqk,bhkd->bhqd", attn, vh)
    x = jnp.transpose(x, (0, 2, 1, 3)).reshape(B, Sq, hid)
    out = x @ params["wfc"] + params["bfc"]
    return out, attn


if __name__ == "__main__":
    B, S, hid_dim, n_heads = 2, 8, 32, 4

    key = jax.random.PRNGKey(0)
    keys = jax.random.split(key, 12)

    def init_linear(kw, kb, fan_in, fan_out):
        bound = 1.0 / jnp.sqrt(jnp.float32(fan_in))
        w = jax.random.uniform(kw, (fan_in, fan_out), jnp.float32, -bound, bound)
        b = jax.random.uniform(kb, (fan_out,), jnp.float32, -bound, bound)
        return w, b

    wq, bq = init_linear(keys[0], keys[1], hid_dim, hid_dim)
    wk, bk = init_linear(keys[2], keys[3], hid_dim, hid_dim)
    wv, bv = init_linear(keys[4], keys[5], hid_dim, hid_dim)
    wfc, bfc = init_linear(keys[6], keys[7], hid_dim, hid_dim)
    params = dict(wq=wq, bq=bq, wk=wk, bk=bk, wv=wv, bv=bv, wfc=wfc, bfc=bfc)

    # One-time prepared params (cached concatenation + dtype casts).
    params_f32 = prepare_params(params, jnp.float32)
    params_bf16 = prepare_params(params, jnp.bfloat16)

    q = jax.random.normal(keys[8], (B, S, hid_dim), jnp.float32)
    k = jax.random.normal(keys[9], (B, S, hid_dim), jnp.float32)
    v = jax.random.normal(keys[10], (B, S, hid_dim), jnp.float32)
    # padding mask: last two key positions of batch 1 are masked out
    mask = jnp.ones((B, 1, 1, S), jnp.float32).at[1, 0, 0, -2:].set(0.0)

    # Test 1: self-attention (fused QKV projection), f32 compute, mask, weights returned.
    fwd_self = jax.jit(lambda x, p, m: multi_head_attention(
        x, x, x, p, n_heads=n_heads, mask=m,
        compute_dtype=jnp.float32, return_weights=True))
    out1, attn1 = fwd_self(q, params_f32, mask)
    out1 = jax.block_until_ready(out1)
    attn1 = jax.block_until_ready(attn1)
    ref1, ref_attn1 = reference_mha(q, q, q, params, n_heads, mask=mask)
    assert out1.shape == (B, S, hid_dim)
    assert attn1.shape == (B, n_heads, S, S)
    # Tolerance covers MXU default-precision matmul decomposition differences vs XLA.
    assert jnp.allclose(out1, ref1, rtol=2e-2, atol=2e-2)
    assert jnp.allclose(attn1, ref_attn1, rtol=2e-2, atol=2e-2)

    # Test 2: cross-attention (separate projections), bf16 MXU operands w/ f32 softmax/acc,
    #         no mask, flash (KV-tiled online-softmax) path, context only.
    fwd_cross = jax.jit(functools.partial(
        multi_head_attention, n_heads=n_heads,
        compute_dtype=jnp.bfloat16, return_weights=False))
    out2, attn2 = fwd_cross(q, k, v, params_bf16, mask=None)
    out2 = jax.block_until_ready(out2)
    ref2, _ = reference_mha(q, k, v, params, n_heads, mask=None)
    assert out2.shape == (B, S, hid_dim)
    assert attn2 is None
    assert jnp.allclose(out2, ref2, rtol=5e-2, atol=5e-2)

    print("KERNEL_OK")
</pallas_src>

<mosaic_0001>
module attributes {stable_mosaic.version = 11 : i64} {
  func.func @_linear_kernel(%arg0: i32, %arg1: i32, %arg2: i32, %arg3: memref<16x32xf32, #tpu.memory_space<vmem>>, %arg4: memref<32x96xf32, #tpu.memory_space<vmem>>, %arg5: memref<1x96xf32, #tpu.memory_space<vmem>>, %arg6: memref<16x96xf32, #tpu.memory_space<vmem>>, %arg7: memref<16x96xf32, #tpu.memory_space<vmem>>) attributes {dimension_semantics = [#tpu.dimension_semantics<parallel>, #tpu.dimension_semantics<parallel>, #tpu.dimension_semantics<arbitrary>], iteration_bounds = array<i64: 1, 1, 1>, scalar_prefetch = 0 : i64, scratch_operands = 1 : i64, tpu.core_type = #tpu.core_type<tc>, window_params = [{transform_indices = @transform_0, window_bounds = array<i64: 16, 32>}, {transform_indices = @transform_1, window_bounds = array<i64: 32, 96>}, {transform_indices = @transform_2, window_bounds = array<i64: 1, 96>}, {transform_indices = @transform_3, window_bounds = array<i64: 16, 96>}]} {
    %c0_i32 = arith.constant 0 : i32
    %0 = arith.cmpi eq, %arg2, %c0_i32 : i32
    %1 = arith.extui %0 : i1 to i32
    %c0_i32_0 = arith.constant 0 : i32
    %2 = arith.cmpi ne, %1, %c0_i32_0 : i32
    scf.if %2 {
      %cst_10 = arith.constant 0.000000e+00 : f32
      %12 = vector.broadcast %cst_10 : f32 to vector<16x96xf32>
      %c0_11 = arith.constant 0 : index
      %c0_12 = arith.constant 0 : index
      %13 = vector.load %arg7[%c0_11, %c0_12] : memref<16x96xf32, #tpu.memory_space<vmem>>, vector<16x96xf32>
      tpu.vector_store %arg7[%c0_11, %c0_12], %12 {strides = array<i32>} : memref<16x96xf32, #tpu.memory_space<vmem>>, vector<16x96xf32>,
    } else {
    }
    %c0 = arith.constant 0 : index
    %c0_1 = arith.constant 0 : index
    %3 = vector.load %arg7[%c0, %c0_1] : memref<16x96xf32, #tpu.memory_space<vmem>>, vector<16x96xf32>
    %c0_2 = arith.constant 0 : index
    %c0_3 = arith.constant 0 : index
    %4 = vector.load %arg3[%c0_2, %c0_3] : memref<16x32xf32, #tpu.memory_space<vmem>>, vector<16x32xf32>
    %c0_4 = arith.constant 0 : index
    %c0_5 = arith.constant 0 : index
    %5 = vector.load %arg4[%c0_4, %c0_5] : memref<32x96xf32, #tpu.memory_space<vmem>>, vector<32x96xf32>
    %cst = arith.constant dense<0.000000e+00> : vector<16x96xf32>
    %6 = tpu.matmul %4, %5, %cst {dimension_numbers = #tpu.dot_dimension_numbers<[1], [0], [0], [1], [0, 0, 1, 1], [], []>} : vector<16x32xf32>, vector<32x96xf32>, vector<16x96xf32> -> vector<16x96xf32>
    %7 = arith.addf %3, %6 : vector<16x96xf32>
    %c0_6 = arith.constant 0 : index
    %c0_7 = arith.constant 0 : index
    %8 = vector.load %arg7[%c0_6, %c0_7] : memref<16x96xf32, #tpu.memory_space<vmem>>, vector<16x96xf32>
    tpu.vector_store %arg7[%c0_6, %c0_7], %7 {strides = array<i32>} : memref<16x96xf32, #tpu.memory_space<vmem>>, vector<16x96xf32>,
    %c0_i32_8 = arith.constant 0 : i32
    %9 = arith.cmpi eq, %arg2, %c0_i32_8 : i32
    %10 = arith.extui %9 : i1 to i32
    %c0_i32_9 = arith.constant 0 : i32
    %11 = arith.cmpi ne, %10, %c0_i32_9 : i32
    scf.if %11 {
      %c0_10 = arith.constant 0 : index
      %c0_11 = arith.constant 0 : index
      %12 = vector.load %arg7[%c0_10, %c0_11] : memref<16x96xf32, #tpu.memory_space<vmem>>, vector<16x96xf32>
      %c0_12 = arith.constant 0 : index
      %c0_13 = arith.constant 0 : index
      %13 = vector.load %arg5[%c0_12, %c0_13] : memref<1x96xf32, #tpu.memory_space<vmem>>, vector<1x96xf32>
      %14 = vector.broadcast %13 : vector<1x96xf32> to vector<16x96xf32>
      %15 = arith.addf %12, %14 : vector<16x96xf32>
      %c0_14 = arith.constant 0 : index
      %c0_15 = arith.constant 0 : index
      %16 = vector.load %arg6[%c0_14, %c0_15] : memref<16x96xf32, #tpu.memory_space<vmem>>, vector<16x96xf32>
      tpu.vector_store %arg6[%c0_14, %c0_15], %15 {strides = array<i32>} : memref<16x96xf32, #tpu.memory_space<vmem>>, vector<16x96xf32>,
    } else {
    }
    return
  }
  func.func @transform_0(%arg0: i32, %arg1: i32, %arg2: i32) -> (i32, i32) {
    %c0_i32 = arith.constant 0 : i32
    return %arg0, %arg2 : i32, i32
  }
  func.func @transform_1(%arg0: i32, %arg1: i32, %arg2: i32) -> (i32, i32) {
    %c0_i32 = arith.constant 0 : i32
    return %arg2, %arg1 : i32, i32
  }
  func.func @transform_2(%arg0: i32, %arg1: i32, %arg2: i32) -> (i32, i32) {
    %c0_i32 = arith.constant 0 : i32
    %c0_i32_0 = arith.constant 0 : i32
    return %c0_i32, %arg1 : i32, i32
  }
  func.func @transform_3(%arg0: i32, %arg1: i32, %arg2: i32) -> (i32, i32) {
    %c0_i32 = arith.constant 0 : i32
    return %arg0, %arg1 : i32, i32
  }
}

module attributes {stable_mosaic.version = 11 : i64} {
  func.func @_attn_weights_kernel(%arg0: i32, %arg1: i32, %arg2: i32, %arg3: memref<1x8x1x4x8xf32, #tpu.memory_space<vmem>>, %arg4: memref<1x8x1x4x8xf32, #tpu.memory_space<vmem>>, %arg5: memref<1x8x1x4x8xf32, #tpu.memory_space<vmem>>, %arg6: memref<1x1x1x8xf32, #tpu.memory_space<vmem>>, %arg7: memref<1x8x32xf32, #tpu.memory_space<vmem>>, %arg8: memref<1x4x8x8xf32, #tpu.memory_space<vmem>>) attributes {dimension_semantics = [#tpu.dimension_semantics<parallel>, #tpu.dimension_semantics<parallel>, #tpu.dimension_semantics<parallel>], iteration_bounds = array<i64: 1, 2, 1>, scalar_prefetch = 0 : i64, scratch_operands = 0 : i64, tpu.core_type = #tpu.core_type<tc>, window_params = [{transform_indices = @transform_0, window_bounds = array<i64: 1, 8, 1, 4, 8>}, {transform_indices = @transform_1, window_bounds = array<i64: 1, 8, 1, 4, 8>}, {transform_indices = @transform_2, window_bounds = array<i64: 1, 8, 1, 4, 8>}, {transform_indices = @transform_3, window_bounds = array<i64: 1, 1, 1, 8>}, {transform_indices = @transform_4, window_bounds = array<i64: 1, 8, 32>}, {transform_indices = @transform_5, window_bounds = array<i64: 1, 4, 8, 8>}]} {
    %c0 = arith.constant 0 : index
    %c0_0 = arith.constant 0 : index
    %c0_1 = arith.constant 0 : index
    %c0_2 = arith.constant 0 : index
    %0 = vector.load %arg6[%c0, %c0_0, %c0_1, %c0_2] : memref<1x1x1x8xf32, #tpu.memory_space<vmem>>, vector<1x1x1x8xf32>
    %1 = vector.shape_cast %0 : vector<1x1x1x8xf32> to vector<1x8xf32>
    %c0_3 = arith.constant 0 : index
    %c0_4 = arith.constant 0 : index
    %c0_5 = arith.constant 0 : index
    %c0_6 = arith.constant 0 : index
    %c0_7 = arith.constant 0 : index
    %2 = vector.load %arg3[%c0_3, %c0_4, %c0_5, %c0_6, %c0_7] : memref<1x8x1x4x8xf32, #tpu.memory_space<vmem>>, vector<1x8x1x1x8xf32>
    %3 = vector.shape_cast %2 : vector<1x8x1x1x8xf32> to vector<8x8xf32>
    %c0_8 = arith.constant 0 : index
    %c0_9 = arith.constant 0 : index
    %c0_10 = arith.constant 0 : index
    %c0_11 = arith.constant 0 : index
    %c0_12 = arith.constant 0 : index
    %4 = vector.load %arg4[%c0_8, %c0_9, %c0_10, %c0_11, %c0_12] : memref<1x8x1x4x8xf32, #tpu.memory_space<vmem>>, vector<1x8x1x1x8xf32>
    %5 = vector.shape_cast %4 : vector<1x8x1x1x8xf32> to vector<8x8xf32>
    %c0_13 = arith.constant 0 : index
    %c0_14 = arith.constant 0 : index
    %c0_15 = arith.constant 0 : index
    %c0_16 = arith.constant 0 : index
    %c0_17 = arith.constant 0 : index
    %6 = vector.load %arg5[%c0_13, %c0_14, %c0_15, %c0_16, %c0_17] : memref<1x8x1x4x8xf32, #tpu.memory_space<vmem>>, vector<1x8x1x1x8xf32>
    %7 = vector.shape_cast %6 : vector<1x8x1x1x8xf32> to vector<8x8xf32>
    %cst = arith.constant 0.353553385 : f32
    %8 = vector.broadcast %cst : f32 to vector<8x8xf32>
    %9 = arith.mulf %3, %8 : vector<8x8xf32>
    %cst_18 = arith.constant dense<0.000000e+00> : vector<8x8xf32>
    %10 = tpu.matmul %9, %5, %cst_18 {dimension_numbers = #tpu.dot_dimension_numbers<[1], [1], [0], [0], [0, 0, 1, 0], [], []>} : vector<8x8xf32>, vector<8x8xf32>, vector<8x8xf32> -> vector<8x8xf32>
    %11 = vector.broadcast %1 : vector<1x8xf32> to vector<8x8xf32>
    %12 = arith.addf %10, %11 : vector<8x8xf32>
    %cst_19 = arith.constant dense<0xFF800000> : vector<8xf32>
    %13 = vector.multi_reduction <maximumf>, %12, %cst_19 [1] : vector<8x8xf32> to vector<8xf32>
    %14 = vector.shape_cast %13 : vector<8xf32> to vector<8x1xf32>
    %15 = vector.broadcast %14 : vector<8x1xf32> to vector<8x8xf32>
    %16 = arith.subf %12, %15 : vector<8x8xf32>
    %17 = math.exp %16 : vector<8x8xf32>
    %cst_20 = arith.constant dense<0.000000e+00> : vector<8xf32>
    %18 = vector.multi_reduction <add>, %17, %cst_20 [1] : vector<8x8xf32> to vector<8xf32>
    %19 = vector.shape_cast %18 : vector<8xf32> to vector<8x1xf32>
    %20 = tpu.reciprocal %19 {approx = true} : vector<8x1xf32> -> vector<8x1xf32>
    %21 = arith.mulf %19, %20 : vector<8x1xf32>
    %cst_21 = arith.constant 2.000000e+00 : f32
    %22 = vector.broadcast %cst_21 : f32 to vector<8x1xf32>
    %23 = arith.subf %22, %21 : vector<8x1xf32>
    %24 = arith.mulf %20, %23 : vector<8x1xf32>
    %25 = vector.broadcast %24 : vector<8x1xf32> to vector<8x8xf32>
    %26 = arith.mulf %17, %25 : vector<8x8xf32>
    %c0_22 = arith.constant 0 : index
    %c0_23 = arith.constant 0 : index
    %c0_24 = arith.constant 0 : index
    %c0_25 = arith.constant 0 : index
    %27 = vector.load %arg8[%c0_22, %c0_23, %c0_24, %c0_25] : memref<1x4x8x8xf32, #tpu.memory_space<vmem>>, vector<1x1x8x8xf32>
    %28 = vector.shape_cast %27 : vector<1x1x8x8xf32> to vector<8x8xf32>
    %29 = vector.shape_cast %26 : vector<8x8xf32> to vector<1x1x8x8xf32>
    tpu.vector_store %arg8[%c0_22, %c0_23, %c0_24, %c0_25], %29 {strides = array<i32>} : memref<1x4x8x8xf32, #tpu.memory_space<vmem>>, vector<1x1x8x8xf32>,
    %cst_26 = arith.constant dense<0.000000e+00> : vector<8x8xf32>
    %30 = tpu.matmul %26, %7, %cst_26 {dimension_numbers = #tpu.dot_dimension_numbers<[1], [0], [0], [1], [0, 0, 1, 1], [], []>} : vector<8x8xf32>, vector<8x8xf32>, vector<8x8xf32> -> vector<8x8xf32>
    %c0_27 = arith.constant 0 : index
    %c0_28 = arith.constant 0 : index
    %c0_29 = arith.constant 0 : index
    %c1 = arith.constant 1 : index
    %c0_30 = arith.constant 0 : index
    %31 = vector.load %arg3[%c0_27, %c0_28, %c0_29, %c1, %c0_30] : memref<1x8x1x4x8xf32, #tpu.memory_space<vmem>>, vector<1x8x1x1x8xf32>
    %32 = vector.shape_cast %31 : vector<1x8x1x1x8xf32> to vector<8x8xf32>
    %c0_31 = arith.constant 0 : index
    %c0_32 = arith.constant 0 : index
    %c0_33 = arith.constant 0 : index
    %c1_34 = arith.constant 1 : index
    %c0_35 = arith.constant 0 : index
    %33 = vector.load %arg4[%c0_31, %c0_32, %c0_33, %c1_34, %c0_35] : memref<1x8x1x4x8xf32, #tpu.memory_space<vmem>>, vector<1x8x1x1x8xf32>
    %34 = vector.shape_cast %33 : vector<1x8x1x1x8xf32> to vector<8x8xf32>
    %c0_36 = arith.constant 0 : index
    %c0_37 = arith.constant 0 : index
    %c0_38 = arith.constant 0 : index
    %c1_39 = arith.constant 1 : index
    %c0_40 = arith.constant 0 : index
    %35 = vector.load %arg5[%c0_36, %c0_37, %c0_38, %c1_39, %c0_40] : memref<1x8x1x4x8xf32, #tpu.memory_space<vmem>>, vector<1x8x1x1x8xf32>
    %36 = vector.shape_cast %35 : vector<1x8x1x1x8xf32> to vector<8x8xf32>
    %cst_41 = arith.constant 0.353553385 : f32
    %37 = vector.broadcast %cst_41 : f32 to vector<8x8xf32>
    %38 = arith.mulf %32, %37 : vector<8x8xf32>
    %cst_42 = arith.constant dense<0.000000e+00> : vector<8x8xf32>
    %39 = tpu.matmul %38, %34, %cst_42 {dimension_numbers = #tpu.dot_dimension_numbers<[1], [1], [0], [0], [0, 0, 1, 0], [], []>} : vector<8x8xf32>, vector<8x8xf32>, vector<8x8xf32> -> vector<8x8xf32>
    %40 = vector.broadcast %1 : vector<1x8xf32> to vector<8x8xf32>
    %41 = arith.addf %39, %40 : vector<8x8xf32>
    %cst_43 = arith.constant dense<0xFF800000> : vector<8xf32>
    %42 = vector.multi_reduction <maximumf>, %41, %cst_43 [1] : vector<8x8xf32> to vector<8xf32>
    %43 = vector.shape_cast %42 : vector<8xf32> to vector<8x1xf32>
    %44 = vector.broadcast %43 : vector<8x1xf32> to vector<8x8xf32>
    %45 = arith.subf %41, %44 : vector<8x8xf32>
    %46 = math.exp %45 : vector<8x8xf32>
    %cst_44 = arith.constant dense<0.000000e+00> : vector<8xf32>
    %47 = vector.multi_reduction <add>, %46, %cst_44 [1] : vector<8x8xf32> to vector<8xf32>
    %48 = vector.shape_cast %47 : vector<8xf32> to vector<8x1xf32>
    %49 = tpu.reciprocal %48 {approx = true} : vector<8x1xf32> -> vector<8x1xf32>
    %50 = arith.mulf %48, %49 : vector<8x1xf32>
    %cst_45 = arith.constant 2.000000e+00 : f32
    %51 = vector.broadcast %cst_45 : f32 to vector<8x1xf32>
    %52 = arith.subf %51, %50 : vector<8x1xf32>
    %53 = arith.mulf %49, %52 : vector<8x1xf32>
    %54 = vector.broadcast %53 : vector<8x1xf32> to vector<8x8xf32>
    %55 = arith.mulf %46, %54 : vector<8x8xf32>
    %c0_46 = arith.constant 0 : index
    %c1_47 = arith.constant 1 : index
    %c0_48 = arith.constant 0 : index
    %c0_49 = arith.constant 0 : index
    %56 = vector.load %arg8[%c0_46, %c1_47, %c0_48, %c0_49] : memref<1x4x8x8xf32, #tpu.memory_space<vmem>>, vector<1x1x8x8xf32>
    %57 = vector.shape_cast %56 : vector<1x1x8x8xf32> to vector<8x8xf32>
    %58 = vector.shape_cast %55 : vector<8x8xf32> to vector<1x1x8x8xf32>
    tpu.vector_store %arg8[%c0_46, %c1_47, %c0_48, %c0_49], %58 {strides = array<i32>} : memref<1x4x8x8xf32, #tpu.memory_space<vmem>>, vector<1x1x8x8xf32>,
    %cst_50 = arith.constant dense<0.000000e+00> : vector<8x8xf32>
    %59 = tpu.matmul %55, %36, %cst_50 {dimension_numbers = #tpu.dot_dimension_numbers<[1], [0], [0], [1], [0, 0, 1, 1], [], []>} : vector<8x8xf32>, vector<8x8xf32>, vector<8x8xf32> -> vector<8x8xf32>
    %c0_51 = arith.constant 0 : index
    %c0_52 = arith.constant 0 : index
    %c0_53 = arith.constant 0 : index
    %c2 = arith.constant 2 : index
    %c0_54 = arith.constant 0 : index
    %60 = vector.load %arg3[%c0_51, %c0_52, %c0_53, %c2, %c0_54] : memref<1x8x1x4x8xf32, #tpu.memory_space<vmem>>, vector<1x8x1x1x8xf32>
    %61 = vector.shape_cast %60 : vector<1x8x1x1x8xf32> to vector<8x8xf32>
    %c0_55 = arith.constant 0 : index
    %c0_56 = arith.constant 0 : index
    %c0_57 = arith.constant 0 : index
    %c2_58 = arith.constant 2 : index
    %c0_59 = arith.constant 0 : index
    %62 = vector.load %arg4[%c0_55, %c0_56, %c0_57, %c2_58, %c0_59] : memref<1x8x1x4x8xf32, #tpu.memory_space<vmem>>, vector<1x8x1x1x8xf32>
    %63 = vector.shape_cast %62 : vector<1x8x1x1x8xf32> to vector<8x8xf32>
    %c0_60 = arith.constant 0 : index
    %c0_61 = arith.constant 0 : index
    %c0_62 = arith.constant 0 : index
    %c2_63 = arith.constant 2 : index
    %c0_64 = arith.constant 0 : index
    %64 = vector.load %arg5[%c0_60, %c0_61, %c0_62, %c2_63, %c0_64] : memref<1x8x1x4x8xf32, #tpu.memory_space<vmem>>, vector<1x8x1x1x8xf32>
    %65 = vector.shape_cast %64 : vector<1x8x1x1x8xf32> to vector<8x8xf32>
    %cst_65 = arith.constant 0.353553385 : f32
    %66 = vector.broadcast %cst_65 : f32 to vector<8x8xf32>
    %67 = arith.mulf %61, %66 : vector<8x8xf32>
    %cst_66 = arith.constant dense<0.000000e+00> : vector<8x8xf32>
    %68 = tpu.matmul %67, %63, %cst_66 {dimension_numbers = #tpu.dot_dimension_numbers<[1], [1], [0], [0], [0, 0, 1, 0], [], []>} : vector<8x8xf32>, vector<8x8xf32>, vector<8x8xf32> -> vector<8x8xf32>
    %69 = vector.broadcast %1 : vector<1x8xf32> to vector<8x8xf32>
    %70 = arith.addf %68, %69 : vector<8x8xf32>
    %cst_67 = arith.constant dense<0xFF800000> : vector<8xf32>
    %71 = vector.multi_reduction <maximumf>, %70, %cst_67 [1] : vector<8x8xf32> to vector<8xf32>
    %72 = vector.shape_cast %71 : vector<8xf32> to vector<8x1xf32>
    %73 = vector.broadcast %72 : vector<8x1xf32> to vector<8x8xf32>
    %74 = arith.subf %70, %73 : vector<8x8xf32>
    %75 = math.exp %74 : vector<8x8xf32>
    %cst_68 = arith.constant dense<0.000000e+00> : vector<8xf32>
    %76 = vector.multi_reduction <add>, %75, %cst_68 [1] : vector<8x8xf32> to vector<8xf32>
    %77 = vector.shape_cast %76 : vector<8xf32> to vector<8x1xf32>
    %78 = tpu.reciprocal %77 {approx = true} : vector<8x1xf32> -> vector<8x1xf32>
    %79 = arith.mulf %77, %78 : vector<8x1xf32>
    %cst_69 = arith.constant 2.000000e+00 : f32
    %80 = vector.broadcast %cst_69 : f32 to vector<8x1xf32>
    %81 = arith.subf %80, %79 : vector<8x1xf32>
    %82 = arith.mulf %78, %81 : vector<8x1xf32>
    %83 = vector.broadcast %82 : vector<8x1xf32> to vector<8x8xf32>
    %84 = arith.mulf %75, %83 : vector<8x8xf32>
    %c0_70 = arith.constant 0 : index
    %c2_71 = arith.constant 2 : index
    %c0_72 = arith.constant 0 : index
    %c0_73 = arith.constant 0 : index
    %85 = vector.load %arg8[%c0_70, %c2_71, %c0_72, %c0_73] : memref<1x4x8x8xf32, #tpu.memory_space<vmem>>, vector<1x1x8x8xf32>
    %86 = vector.shape_cast %85 : vector<1x1x8x8xf32> to vector<8x8xf32>
    %87 = vector.shape_cast %84 : vector<8x8xf32> to vector<1x1x8x8xf32>
    tpu.vector_store %arg8[%c0_70, %c2_71, %c0_72, %c0_73], %87 {strides = array<i32>} : memref<1x4x8x8xf32, #tpu.memory_space<vmem>>, vector<1x1x8x8xf32>,
    %cst_74 = arith.constant dense<0.000000e+00> : vector<8x8xf32>
    %88 = tpu.matmul %84, %65, %cst_74 {dimension_numbers = #tpu.dot_dimension_numbers<[1], [0], [0], [1], [0, 0, 1, 1], [], []>} : vector<8x8xf32>, vector<8x8xf32>, vector<8x8xf32> -> vector<8x8xf32>
    %c0_75 = arith.constant 0 : index
    %c0_76 = arith.constant 0 : index
    %c0_77 = arith.constant 0 : index
    %c3 = arith.constant 3 : index
    %c0_78 = arith.constant 0 : index
    %89 = vector.load %arg3[%c0_75, %c0_76, %c0_77, %c3, %c0_78] : memref<1x8x1x4x8xf32, #tpu.memory_space<vmem>>, vector<1x8x1x1x8xf32>
    %90 = vector.shape_cast %89 : vector<1x8x1x1x8xf32> to vector<8x8xf32>
    %c0_79 = arith.constant 0 : index
    %c0_80 = arith.constant 0 : index
    %c0_81 = arith.constant 0 : index
    %c3_82 = arith.constant 3 : index
    %c0_83 = arith.constant 0 : index
    %91 = vector.load %arg4[%c0_79, %c0_80, %c0_81, %c3_82, %c0_83] : memref<1x8x1x4x8xf32, #tpu.memory_space<vmem>>, vector<1x8x1x1x8xf32>
    %92 = vector.shape_cast %91 : vector<1x8x1x1x8xf32> to vector<8x8xf32>
    %c0_84 = arith.constant 0 : index
    %c0_85 = arith.constant 0 : index
    %c0_86 = arith.constant 0 : index
    %c3_87 = arith.constant 3 : index
    %c0_88 = arith.constant 0 : index
    %93 = vector.load %arg5[%c0_84, %c0_85, %c0_86, %c3_87, %c0_88] : memref<1x8x1x4x8xf32, #tpu.memory_space<vmem>>, vector<1x8x1x1x8xf32>
    %94 = vector.shape_cast %93 : vector<1x8x1x1x8xf32> to vector<8x8xf32>
    %cst_89 = arith.constant 0.353553385 : f32
    %95 = vector.broadcast %cst_89 : f32 to vector<8x8xf32>
    %96 = arith.mulf %90, %95 : vector<8x8xf32>
    %cst_90 = arith.constant dense<0.000000e+00> : vector<8x8xf32>
    %97 = tpu.matmul %96, %92, %cst_90 {dimension_numbers = #tpu.dot_dimension_numbers<[1], [1], [0], [0], [0, 0, 1, 0], [], []>} : vector<8x8xf32>, vector<8x8xf32>, vector<8x8xf32> -> vector<8x8xf32>
    %98 = vector.broadcast %1 : vector<1x8xf32> to vector<8x8xf32>
    %99 = arith.addf %97, %98 : vector<8x8xf32>
    %cst_91 = arith.constant dense<0xFF800000> : vector<8xf32>
    %100 = vector.multi_reduction <maximumf>, %99, %cst_91 [1] : vector<8x8xf32> to vector<8xf32>
    %101 = vector.shape_cast %100 : vector<8xf32> to vector<8x1xf32>
    %102 = vector.broadcast %101 : vector<8x1xf32> to vector<8x8xf32>
    %103 = arith.subf %99, %102 : vector<8x8xf32>
    %104 = math.exp %103 : vector<8x8xf32>
    %cst_92 = arith.constant dense<0.000000e+00> : vector<8xf32>
    %105 = vector.multi_reduction <add>, %104, %cst_92 [1] : vector<8x8xf32> to vector<8xf32>
    %106 = vector.shape_cast %105 : vector<8xf32> to vector<8x1xf32>
    %107 = tpu.reciprocal %106 {approx = true} : vector<8x1xf32> -> vector<8x1xf32>
    %108 = arith.mulf %106, %107 : vector<8x1xf32>
    %cst_93 = arith.constant 2.000000e+00 : f32
    %109 = vector.broadcast %cst_93 : f32 to vector<8x1xf32>
    %110 = arith.subf %109, %108 : vector<8x1xf32>
    %111 = arith.mulf %107, %110 : vector<8x1xf32>
    %112 = vector.broadcast %111 : vector<8x1xf32> to vector<8x8xf32>
    %113 = arith.mulf %104, %112 : vector<8x8xf32>
    %c0_94 = arith.constant 0 : index
    %c3_95 = arith.constant 3 : index
    %c0_96 = arith.constant 0 : index
    %c0_97 = arith.constant 0 : index
    %114 = vector.load %arg8[%c0_94, %c3_95, %c0_96, %c0_97] : memref<1x4x8x8xf32, #tpu.memory_space<vmem>>, vector<1x1x8x8xf32>
    %115 = vector.shape_cast %114 : vector<1x1x8x8xf32> to vector<8x8xf32>
    %116 = vector.shape_cast %113 : vector<8x8xf32> to vector<1x1x8x8xf32>
    tpu.vector_store %arg8[%c0_94, %c3_95, %c0_96, %c0_97], %116 {strides = array<i32>} : memref<1x4x8x8xf32, #tpu.memory_space<vmem>>, vector<1x1x8x8xf32>,
    %cst_98 = arith.constant dense<0.000000e+00> : vector<8x8xf32>
    %117 = tpu.matmul %113, %94, %cst_98 {dimension_numbers = #tpu.dot_dimension_numbers<[1], [0], [0], [1], [0, 0, 1, 1], [], []>} : vector<8x8xf32>, vector<8x8xf32>, vector<8x8xf32> -> vector<8x8xf32>
    %118 = tpu.concatenate %30, %59, %88, %117 in 1 : vector<8x8xf32>, vector<8x8xf32>, vector<8x8xf32>, vector<8x8xf32> -> vector<8x32xf32>
    %c0_99 = arith.constant 0 : index
    %c0_100 = arith.constant 0 : index
    %c0_101 = arith.constant 0 : index
    %119 = vector.load %arg7[%c0_99, %c0_100, %c0_101] : memref<1x8x32xf32, #tpu.memory_space<vmem>>, vector<1x8x32xf32>
    %120 = vector.shape_cast %119 : vector<1x8x32xf32> to vector<8x32xf32>
    %121 = vector.shape_cast %118 : vector<8x32xf32> to vector<1x8x32xf32>
    tpu.vector_store %arg7[%c0_99, %c0_100, %c0_101], %121 {strides = array<i32>} : memref<1x8x32xf32, #tpu.memory_space<vmem>>, vector<1x8x32xf32>,
    return
  }
  func.func @transform_0(%arg0: i32, %arg1: i32, %arg2: i32) -> (i32, i32, i32, i32, i32) {
    %c0_i32 = arith.constant 0 : i32
    %c0_i32_0 = arith.constant 0 : i32
    %c0_i32_1 = arith.constant 0 : i32
    return %arg1, %arg2, %c0_i32, %arg0, %c0_i32_0 : i32, i32, i32, i32, i32
  }
  func.func @transform_1(%arg0: i32, %arg1: i32, %arg2: i32) -> (i32, i32, i32, i32, i32) {
    %c0_i32 = arith.constant 0 : i32
    %c1_i32 = arith.constant 1 : i32
    %c0_i32_0 = arith.constant 0 : i32
    %c0_i32_1 = arith.constant 0 : i32
    return %arg1, %c0_i32, %c1_i32, %arg0, %c0_i32_0 : i32, i32, i32, i32, i32
  }
  func.func @transform_2(%arg0: i32, %arg1: i32, %arg2: i32) -> (i32, i32, i32, i32, i32) {
    %c0_i32 = arith.constant 0 : i32
    %c2_i32 = arith.constant 2 : i32
    %c0_i32_0 = arith.constant 0 : i32
    %c0_i32_1 = arith.constant 0 : i32
    return %arg1, %c0_i32, %c2_i32, %arg0, %c0_i32_0 : i32, i32, i32, i32, i32
  }
  func.func @transform_3(%arg0: i32, %arg1: i32, %arg2: i32) -> (i32, i32, i32, i32) {
    %c0_i32 = arith.constant 0 : i32
    %c0_i32_0 = arith.constant 0 : i32
    %c0_i32_1 = arith.constant 0 : i32
    %c0_i32_2 = arith.constant 0 : i32
    return %arg1, %c0_i32, %c0_i32_0, %c0_i32_1 : i32, i32, i32, i32
  }
  func.func @transform_4(%arg0: i32, %arg1: i32, %arg2: i32) -> (i32, i32, i32) {
    %c0_i32 = arith.constant 0 : i32
    return %arg1, %arg2, %arg0 : i32, i32, i32
  }
  func.func @transform_5(%arg0: i32, %arg1: i32, %arg2: i32) -> (i32, i32, i32, i32) {
    %c0_i32 = arith.constant 0 : i32
    %c0_i32_0 = arith.constant 0 : i32
    return %arg1, %arg0, %arg2, %c0_i32 : i32, i32, i32, i32
  }
}

module attributes {stable_mosaic.version = 11 : i64} {
  func.func @_linear_kernel(%arg0: i32, %arg1: i32, %arg2: i32, %arg3: memref<16x32xf32, #tpu.memory_space<vmem>>, %arg4: memref<32x32xf32, #tpu.memory_space<vmem>>, %arg5: memref<1x32xf32, #tpu.memory_space<vmem>>, %arg6: memref<16x32xf32, #tpu.memory_space<vmem>>, %arg7: memref<16x32xf32, #tpu.memory_space<vmem>>) attributes {dimension_semantics = [#tpu.dimension_semantics<parallel>, #tpu.dimension_semantics<parallel>, #tpu.dimension_semantics<arbitrary>], iteration_bounds = array<i64: 1, 1, 1>, scalar_prefetch = 0 : i64, scratch_operands = 1 : i64, tpu.core_type = #tpu.core_type<tc>, window_params = [{transform_indices = @transform_0, window_bounds = array<i64: 16, 32>}, {transform_indices = @transform_1, window_bounds = array<i64: 32, 32>}, {transform_indices = @transform_2, window_bounds = array<i64: 1, 32>}, {transform_indices = @transform_3, window_bounds = array<i64: 16, 32>}]} {
    %c0_i32 = arith.constant 0 : i32
    %0 = arith.cmpi eq, %arg2, %c0_i32 : i32
    %1 = arith.extui %0 : i1 to i32
    %c0_i32_0 = arith.constant 0 : i32
    %2 = arith.cmpi ne, %1, %c0_i32_0 : i32
    scf.if %2 {
      %cst_10 = arith.constant 0.000000e+00 : f32
      %12 = vector.broadcast %cst_10 : f32 to vector<16x32xf32>
      %c0_11 = arith.constant 0 : index
      %c0_12 = arith.constant 0 : index
      %13 = vector.load %arg7[%c0_11, %c0_12] : memref<16x32xf32, #tpu.memory_space<vmem>>, vector<16x32xf32>
      tpu.vector_store %arg7[%c0_11, %c0_12], %12 {strides = array<i32>} : memref<16x32xf32, #tpu.memory_space<vmem>>, vector<16x32xf32>,
    } else {
    }
    %c0 = arith.constant 0 : index
    %c0_1 = arith.constant 0 : index
    %3 = vector.load %arg7[%c0, %c0_1] : memref<16x32xf32, #tpu.memory_space<vmem>>, vector<16x32xf32>
    %c0_2 = arith.constant 0 : index
    %c0_3 = arith.constant 0 : index
    %4 = vector.load %arg3[%c0_2, %c0_3] : memref<16x32xf32, #tpu.memory_space<vmem>>, vector<16x32xf32>
    %c0_4 = arith.constant 0 : index
    %c0_5 = arith.constant 0 : index
    %5 = vector.load %arg4[%c0_4, %c0_5] : memref<32x32xf32, #tpu.memory_space<vmem>>, vector<32x32xf32>
    %cst = arith.constant dense<0.000000e+00> : vector<16x32xf32>
    %6 = tpu.matmul %4, %5, %cst {dimension_numbers = #tpu.dot_dimension_numbers<[1], [0], [0], [1], [0, 0, 1, 1], [], []>} : vector<16x32xf32>, vector<32x32xf32>, vector<16x32xf32> -> vector<16x32xf32>
    %7 = arith.addf %3, %6 : vector<16x32xf32>
    %c0_6 = arith.constant 0 : index
    %c0_7 = arith.constant 0 : index
    %8 = vector.load %arg7[%c0_6, %c0_7] : memref<16x32xf32, #tpu.memory_space<vmem>>, vector<16x32xf32>
    tpu.vector_store %arg7[%c0_6, %c0_7], %7 {strides = array<i32>} : memref<16x32xf32, #tpu.memory_space<vmem>>, vector<16x32xf32>,
    %c0_i32_8 = arith.constant 0 : i32
    %9 = arith.cmpi eq, %arg2, %c0_i32_8 : i32
    %10 = arith.extui %9 : i1 to i32
    %c0_i32_9 = arith.constant 0 : i32
    %11 = arith.cmpi ne, %10, %c0_i32_9 : i32
    scf.if %11 {
      %c0_10 = arith.constant 0 : index
      %c0_11 = arith.constant 0 : index
      %12 = vector.load %arg7[%c0_10, %c0_11] : memref<16x32xf32, #tpu.memory_space<vmem>>, vector<16x32xf32>
      %c0_12 = arith.constant 0 : index
      %c0_13 = arith.constant 0 : index
      %13 = vector.load %arg5[%c0_12, %c0_13] : memref<1x32xf32, #tpu.memory_space<vmem>>, vector<1x32xf32>
      %14 = vector.broadcast %13 : vector<1x32xf32> to vector<16x32xf32>
      %15 = arith.addf %12, %14 : vector<16x32xf32>
      %c0_14 = arith.constant 0 : index
      %c0_15 = arith.constant 0 : index
      %16 = vector.load %arg6[%c0_14, %c0_15] : memref<16x32xf32, #tpu.memory_space<vmem>>, vector<16x32xf32>
      tpu.vector_store %arg6[%c0_14, %c0_15], %15 {strides = array<i32>} : memref<16x32xf32, #tpu.memory_space<vmem>>, vector<16x32xf32>,
    } else {
    }
    return
  }
  func.func @transform_0(%arg0: i32, %arg1: i32, %arg2: i32) -> (i32, i32) {
    %c0_i32 = arith.constant 0 : i32
    return %arg0, %arg2 : i32, i32
  }
  func.func @transform_1(%arg0: i32, %arg1: i32, %arg2: i32) -> (i32, i32) {
    %c0_i32 = arith.constant 0 : i32
    return %arg2, %arg1 : i32, i32
  }
  func.func @transform_2(%arg0: i32, %arg1: i32, %arg2: i32) -> (i32, i32) {
    %c0_i32 = arith.constant 0 : i32
    %c0_i32_0 = arith.constant 0 : i32
    return %c0_i32, %arg1 : i32, i32
  }
  func.func @transform_3(%arg0: i32, %arg1: i32, %arg2: i32) -> (i32, i32) {
    %c0_i32 = arith.constant 0 : i32
    return %arg0, %arg1 : i32, i32
  }
}

</mosaic_0001>

<bundles_post_ra>
// kernel: _lambda_.5
= control target key start
LH: loop header
LB: loop body
LE: loop exit
PB: predicated region body
PF: predicated region fallthrough
CT: control target
= control target key end

     0   :  { %vm19_vm0 = vcmask 261120   ;;  %v194_v3 = vmov 0.0   ;;  %s250_s0 = inlined_call_operand.vmem [shape: f32[16,32], index: 0, kind: input, shape index: {}]   ;;  %s251_s1 = inlined_call_operand.vmem [shape: f32[32,32], index: 1, kind: input, shape index: {}]   ;;  %s252_s2 = inlined_call_operand.vmem [shape: f32[1,32], index: 2, kind: input, shape index: {}]   ;;  %s253_s3 = inlined_call_operand.hbm [shape: f32[16,32], index: 3, kind: output, shape index: {}]  }
   0x1   :  { %v29_v0 = vld [vmem:[%s251_s1 + $0x18] sm:$0xff]  ;;  %v28_v1 = vld [vmem:[%s251_s1 + $0x10] sm:$0xff]  ;;  %v24_v2 = vld [vmem:[%s250_s0] sm:$0xff]  ;;  %21 = vst.msk [vmem:[#allocation2 + $0x8] sm:$0xff] %vm19_vm0, %v194_v3 }
   0x2   :  { %157 = vmatprep.subr.mxu0 %v29_v0  ;;  %20 = vst.msk [vmem:[#allocation2] sm:$0xff] %vm19_vm0, %v194_v3  ;;  %v27_v4 = vld [vmem:[%s251_s1 + $0x8] sm:$0xff]  ;;  %165 = vmatprep.mubr.msk.f32.mxu0 %vm19_vm0, %v24_v2 }
   0x3   :  { %158 = vmatpush3.msra.mxu0 %v29_v0 }
   0x4   :  { %8 = vsyncpa [#allocation4], 0  ;;  %159 = vmatprep.subr.mxu0 %v28_v1  ;;  %v26_v5 = vld [vmem:[%s251_s1] sm:$0xff]  ;;  %v25_v6 = vld [vmem:[%s250_s0 + $0x8] sm:$0xff]  ;;  %s195_s25 = smov [#allocation3]  }
   0x5   :  { %160 = vmatpush3.msra.mxu0 %v28_v1  ;;  %v150_v13 = vld [vmem:[%s252_s2] ss:$0 sm:$0xff]  ;;  %s137_s0 = sshll.u32 %s195_s25, 4  ;;  %s138_s0 = int_to_ptr.vmem [resolvable:$true] %s137_s0 }
   0x6   :  { %161 = vmatprep.subr.mxu0 %v27_v4  ;;  %s172_s26 = scalar_lea.vmem %s138_s0, 256  ;;  %p177_p1 = scmp.lt.s32.totalorder %s138_s0, %s138_s0 }
   0x7   :  { %162 = vmatpush3.msra.mxu0 %v27_v4  ;;  %p173_p0 = scmp.ne.s32.totalorder %s138_s0, %s172_s26  ;;  %p178_p2 = scmp.lt.s32.totalorder %s172_s26, %s172_s26 }
   0x8   :  { %163 = vmatprep.subr.mxu0 %v26_v5  ;;  %v23_v7 = vld [vmem:[#allocation2 + $0x8] sm:$0xff] }
   0x9   :  { %164 = vmatpush3.msra.mxu0 %v26_v5  ;;  %v22_v9 = vld [vmem:[#allocation2] sm:$0xff]  ;;  %p179_p3 = por %p178_p2, %p177_p1 }
   0xa   :  { %166 = vmatmul.mubr.msk.f32.vlgmr.msra.gmra.mxu0 %vm19_vm0, %v25_v6 }
   0xb   :  { %p180_p4 = pnand %p179_p3, %p173_p0 }
  0xca   :  { %v167_v8 = vpop.f32.mrf.mxu0 }
  0xcb   :  { %v113_v10 = vadd.f32 %v167_v8, %v23_v7 }
  0xcc   :  { %v103_v11 = vpop.f32.mrf.mxu0 }
  0xcd   :  { %115 = vst.msk [vmem:[#allocation2 + $0x8] sm:$0xff] %vm19_vm0, %v113_v10  ;;  %v112_v12 = vadd.f32 %v103_v11, %v22_v9 }
  0xcf   :  { %114 = vst.msk [vmem:[#allocation2] sm:$0xff] %vm19_vm0, %v112_v12 }
  0xd4   :  { %v120_v14 = vld [vmem:[#allocation2 + $0x8] sm:$0xff] }
  0xd5   :  { %v129_v15 = vadd.f32 %v150_v13, %v120_v14 }
  0xd6   :  { %v119_v16 = vld [vmem:[#allocation2] sm:$0xff] }
  0xd7   :  { %v128_v17 = vadd.f32 %v150_v13, %v119_v16  ;;  %131 = vst.msk [vmem:[#allocation3 + $0x8] sm:$0xff] %vm19_vm0, %v129_v15 }
  0xd9   :  { %130 = vst.msk [vmem:[#allocation3] sm:$0xff] %vm19_vm0, %v128_v17 }
  0xda   :  { %183 = shalt.err (!%p180_p4)
}
  0xdb   :  { %s196_s27 = smov 128   ;;  %s197_s2 = smov 8  }
  0xdc   :  { %143 = dma.vmem_to_hbm [thread:$0]  %s138_s0, 256, %s253_s3, [#allocation4], %s196_s27, %s196_s27, %s197_s2  }
  0xdd   :  { %192 = dma.done.wait [#allocation4], 256  }
  0xde   :  { %193 = vsyncadd [#allocation4], 4294967040 }
  0xdf   :  { %147 = vsyncpa [#allocation4], 1 }

// kernel: _lambda_.3
= control target key start
LH: loop header
LB: loop body
LE: loop exit
PB: predicated region body
PF: predicated region fallthrough
CT: control target
= control target key end

     0   :  { %8 = vsyncpa [#allocation4], 0  ;;  %s283_s0 = inlined_call_operand.hbm [shape: f32[16,32], index: 0, kind: input, shape index: {}]   ;;  %s284_s1 = inlined_call_operand.hbm [shape: f32[32,96], index: 1, kind: input, shape index: {}]   ;;  %s285_s2 = inlined_call_operand.vmem [shape: f32[1,96], index: 2, kind: input, shape index: {}]   ;;  %s286_s3 = inlined_call_operand.vmem [shape: f32[16,96], index: 3, kind: output, shape index: {}]  }
   0x1   :  { %9 = vsyncpa [#allocation6], 0  ;;  %s235_s12 = smov [#allocation3]  }
   0x2   :  { %s15_s13 = sshll.u32 %s235_s12, 4  ;;  %s16_s13 = int_to_ptr.vmem [resolvable:$true] %s15_s13 }
   0x3   :  { %s199_s14 = scalar_lea.vmem %s16_s13, 256  ;;  %p204_p1 = scmp.lt.s32.totalorder %s16_s13, %s16_s13 }
   0x4   :  { %p200_p0 = scmp.ne.s32.totalorder %s16_s13, %s199_s14  ;;  %p205_p2 = scmp.lt.s32.totalorder %s199_s14, %s199_s14 }
   0x6   :  { %p206_p3 = por %p205_p2, %p204_p1 }
   0x8   :  { %p207_p4 = pnand %p206_p3, %p200_p0 }
   0xa   :  { %210 = shalt.err (!%p207_p4)
}
   0xb   :  { %s236_s15 = smov 128   ;;  %s237_s16 = smov 8  }
   0xc   :  { %21 = dma.hbm_to_vmem [thread:$0]  %s283_s0, 256, %s16_s13, [#allocation4], %s236_s15, %s236_s15, %s237_s16  }
   0xd   :  { %s238_s19 = smov [#allocation5]  }
   0xe   :  { %s27_s20 = sshll.u32 %s238_s19, 4  ;;  %s28_s20 = int_to_ptr.vmem [resolvable:$true] %s27_s20 }
   0xf   :  { %s219_s21 = scalar_lea.vmem %s28_s20, 512  ;;  %p224_p6 = scmp.lt.s32.totalorder %s28_s20, %s28_s20 }
  0x10   :  { %p220_p5 = scmp.ne.s32.totalorder %s28_s20, %s219_s21  ;;  %p225_p7 = scmp.lt.s32.totalorder %s219_s21, %s219_s21 }
  0x12   :  { %p226_p8 = por %p225_p7, %p224_p6 }
  0x14   :  { %p227_p9 = pnand %p226_p8, %p220_p5 }
  0x16   :  { %230 = shalt.err (!%p227_p9)
}
  0x17   :  { %33 = dma.hbm_to_vmem [thread:$0]  %s284_s1, 512, %s28_s20, [#allocation6], %s236_s15, %s236_s15, %s237_s16  }
  0x18   :  { %231 = dma.done.wait [#allocation4], 256  }
  0x19   :  { %232 = vsyncadd [#allocation4], 4294967040 }
  0x1a   :  { %233 = dma.done.wait [#allocation6], 512  }
  0x1b   :  { %234 = vsyncadd [#allocation6], 4294966784  ;;  %vm46_vm0 = vcmask 785408   ;;  %v239_v0 = vmov 0.0   ;;  %vm57_vm1 = vcmask 261120   ;;  %v56_v1 = vld [vmem:[#allocation5 + $0x18] sm:$0xff] }
  0x1c   :  { %48 = vst.msk [vmem:[#allocation2 + $0x8] sm:$0xff] %vm46_vm0, %v239_v0  ;;  %47 = vst.msk [vmem:[#allocation2] sm:$0xff] %vm46_vm0, %v239_v0  ;;  %v55_v2 = vld [vmem:[#allocation5 + $0x10] sm:$0xff]  ;;  %175 = vmatprep.subr.mxu0 %v56_v1  ;;  %v54_v4 = vld [vmem:[#allocation5 + $0x8] sm:$0xff] }
  0x1d   :  { %v51_v3 = vld [vmem:[#allocation3] sm:$0xff]  ;;  %176 = vmatpush3.msra.mxu0 %v56_v1  ;;  %v53_v5 = vld [vmem:[#allocation5] sm:$0xff]  ;;  %v52_v6 = vld [vmem:[#allocation3 + $0x8] sm:$0xff] }
  0x1e   :  { %183 = vmatprep.mubr.msk.f32.mxu0 %vm57_vm1, %v51_v3  ;;  %177 = vmatprep.subr.mxu0 %v55_v2  ;;  %v168_v13 = vld [vmem:[%s285_s2] ss:$0 sm:$0xff] }
  0x1f   :  { %178 = vmatpush3.msra.mxu0 %v55_v2 }
  0x20   :  { %179 = vmatprep.subr.mxu0 %v54_v4 }
  0x21   :  { %180 = vmatpush3.msra.mxu0 %v54_v4 }
  0x22   :  { %181 = vmatprep.subr.mxu0 %v53_v5 }
  0x23   :  { %182 = vmatpush3.msra.mxu0 %v53_v5  ;;  %v50_v7 = vld [vmem:[#allocation2 + $0x8] sm:$0xff]  ;;  %v49_v9 = vld [vmem:[#allocation2] sm:$0xff] }
  0x24   :  { %184 = vmatmul.mubr.msk.f32.vlgmr.msra.gmra.mxu0 %vm57_vm1, %v52_v6 }
  0xe4   :  { %v185_v8 = vpop.f32.mrf.mxu0 }
  0xe5   :  { %v140_v10 = vadd.f32 %v185_v8, %v50_v7 }
  0xe6   :  { %v130_v11 = vpop.f32.mrf.mxu0 }
  0xe7   :  { %143 = vst.msk [vmem:[#allocation2 + $0x8] sm:$0xff] %vm46_vm0, %v140_v10  ;;  %v139_v12 = vadd.f32 %v130_v11, %v49_v9 }
  0xe9   :  { %142 = vst.msk [vmem:[#allocation2] sm:$0xff] %vm46_vm0, %v139_v12 }
  0xee   :  { %v148_v14 = vld [vmem:[#allocation2 + $0x8] sm:$0xff] }
  0xef   :  { %v157_v15 = vadd.f32 %v168_v13, %v148_v14 }
  0xf0   :  { %v147_v16 = vld [vmem:[#allocation2] sm:$0xff] }
  0xf1   :  { %159 = vst.msk [vmem:[%s286_s3 + $0x8] sm:$0xff] %vm46_vm0, %v157_v15  ;;  %v156_v17 = vadd.f32 %v168_v13, %v147_v16 }
  0xf3   :  { %158 = vst.msk [vmem:[%s286_s3] sm:$0xff] %vm46_vm0, %v156_v17 }
  0xf4   :  { %164 = vsyncpa [#allocation4], 1 }
  0xf5   :  { %165 = vsyncpa [#allocation6], 1 }

// kernel: _lambda_.4
= control target key start
LH: loop header
LB: loop body
LE: loop exit
PB: predicated region body
PF: predicated region fallthrough
CT: control target
= control target key end

     0   :  { %11 = vsyncpa [#allocation6], 0  ;;  %s2600_s0 = inlined_call_operand.vmem [shape: f32[2,8,3,4,8], index: 0, kind: input, shape index: {}, may-alias: {0,1,2}]   ;;  %s2601_s1 = inlined_call_operand.vmem [shape: f32[2,8,3,4,8], index: 1, kind: input, shape index: {}, may-alias: {0,1,2}]   ;;  %s2602_s2 = inlined_call_operand.vmem [shape: f32[2,8,3,4,8], index: 2, kind: input, shape index: {}, may-alias: {0,1,2}]   ;;  %s2603_s3 = inlined_call_operand.vmem [shape: f32[2,1,1,8], index: 3, kind: input, shape index: {}]   ;;  %s2604_s4 = inlined_call_operand.vmem [shape: f32[2,8,32], index: 4, kind: output, shape index: {0}]   ;;  %s2605_s5 = inlined_call_operand.hbm [shape: f32[2,4,8,8], index: 5, kind: output, shape index: {1}]  }
   0x1   :  { %13 = vsyncpa [#allocation6 + $0x1], 0  ;;  %s2151_s18 = smov 0   ;;  %s2153_s19 = smov 0  }
   0x2   :  { %s2155_s20 = smov 0   ;;  %s2157_s21 = smov 0  }
   0x3   :  { %s2159_s22 = smov 0   ;;  %s2161_s23 = smov 0  }
   0x4 LB: > { %s1848_s24 = sadd.s32 4294967295, %s2112_s23   ;;  %s1849_s25 = sadd.s32 4294967294, %s2112_s23   ;;  %s2112_s23 = sphi %s2161_s23, %s19_s23   ;;  %s2108_s22 = sphi %s2159_s22, %s2613_s22   ;;  %s2104_s21 = sphi %s2157_s21, %s2612_s21   ;;  %s2100_s20 = sphi %s2155_s20, %s2611_s20   ;;  %s2096_s19 = sphi %s2153_s19, %s2610_s19   ;;  %s2092_s18 = sphi %s2151_s18, %s2609_s18  }
   0x5   : > { %s34_s26 = sadd.s32 1, %s2108_s22  ;;  %s49_s27 = sadd.s32 1, %s2100_s20 }
   0x6   : > { %p36_p0 = scmp.ge.s32.totalorder %s34_s26, 2  ;;  %p56_p1 = scmp.ne.s32.totalorder %s2100_s20, %s2096_s19 }
   0x7   : > { %p57_p2 = scmp.eq.s32.totalorder %s2112_s23, 0  ;;  %p202_p3 = scmp.eq.s32.totalorder %s1848_s24, 1 }
   0x8   : > { %s2615_s26 = smov (%p36_p0, %s34_s26), 0  ;;  %p207_p6 = scmp.ne.s32.totalorder %s2096_s19, %s2092_s18 }
   0x9   : > { %p2190_p4 = por %p57_p2, %p56_p1  ;;  %p2194_p5 = por %p202_p3, %p56_p1 }
   0xa   : > { %s42_s30 = ssub.s32 %s2108_s22, %s2615_s26  ;;  %p208_p8 = scmp.eq.s32.totalorder %s1849_s25, 1 }
   0xb   : > { %p47_p7 = scmp.eq.s32.totalorder %s42_s30, 0  ;;  %p1851_p10 = scmp.ge.s32.totalorder %s2112_s23, 2 }
   0xc   : > { %p2205_p9 = por %p208_p8, %p207_p6 }
   0xd   : > { %s2203_s6 = scalar_select %p47_p7, %s2100_s20, %s49_s27  }
   0xe   : > { %224 = sbr.rel (%p1851_p10) target bundleno = 49 (0x31), region = 16 }
  0x13   : > { %227 = sbr.rel (!%p2190_p4) target bundleno = 29 (0x1d), region = 20  ;;  %s229_s8 = sand.u32 (%p2190_p4), 1, %s2100_s20  }
  0x14   : > { %s1958_s9 = smul.u32 (%p2190_p4), 96, %s2108_s22  ;;  %s1852_s10 = sshll.u32 (%p2190_p4), %s229_s8, 5 }
  0x15   : > { %s231_s14 = scalar_lea.vmem (%p2190_p4), [#allocation2], %s1852_s10 }
  0x16   : > { %s238_s13 = scalar_lea.vmem (%p2190_p4), %s2600_s0, %s1958_s9 }
  0x17   : > { %v255_v0 = vld [vmem:[%s238_s13] sm:$0xf] (%p2190_p4)  ;;  %v257_v1 = vld [vmem:[%s238_s13 + $0xc] sm:$0xf] (%p2190_p4)  ;;  %v259_v2 = vld [vmem:[%s238_s13 + $0x18] sm:$0xf] (%p2190_p4) }
  0x18   : > { %256 = vst [vmem:[%s231_s14] sm:$0xf] %v255_v0  ;;  %258 = vst [vmem:[%s231_s14 + $0x4] sm:$0xf] %v257_v1  ;;  %v261_v3 = vld [vmem:[%s238_s13 + $0x24] sm:$0xf] }
  0x19   : > { %260 = vst [vmem:[%s231_s14 + $0x8] sm:$0xf] %v259_v2  ;;  %v263_v4 = vld [vmem:[%s238_s13 + $0x30] sm:$0xf]  ;;  %v265_v5 = vld [vmem:[%s238_s13 + $0x3c] sm:$0xf] }
  0x1a   : > { %262 = vst [vmem:[%s231_s14 + $0xc] sm:$0xf] %v261_v3  ;;  %264 = vst [vmem:[%s231_s14 + $0x10] sm:$0xf] %v263_v4  ;;  %v267_v6 = vld [vmem:[%s238_s13 + $0x48] sm:$0xf] }
  0x1b   : > { %266 = vst [vmem:[%s231_s14 + $0x14] sm:$0xf] %v265_v5  ;;  %v269_v7 = vld [vmem:[%s238_s13 + $0x54] sm:$0xf]  ;;  %268 = vst [vmem:[%s231_s14 + $0x18] sm:$0xf] %v267_v6 }
  0x1c   : > { %270 = vst [vmem:[%s231_s14 + $0x1c] sm:$0xf] %v269_v7 }
  0x1d PF: > { %310 = sbr.rel (!%p2190_p4) target bundleno = 39 (0x27), region = 61  ;;  %s312_s15 = sand.u32 (%p2190_p4), 1, %s2100_s20  }
  0x1e   : > { %s1855_s16 = smul.u32 (%p2190_p4), 96, %s2108_s22  ;;  %s1854_s17 = sshll.u32 (%p2190_p4), %s312_s15, 5 }
  0x1f   : > { %s314_s30 = scalar_lea.vmem (%p2190_p4), [#allocation3], %s1854_s17 }
  0x20   : > { %s1722_s27 = scalar_lea.vmem (%p2190_p4), %s2601_s1, %s1855_s16 }
  0x21   : > { %v1856_v8 = vld [vmem:[%s1722_s27 + $0x4] sm:$0xf] (%p2190_p4)  ;;  %v1857_v9 = vld [vmem:[%s1722_s27 + $0x10] sm:$0xf] (%p2190_p4)  ;;  %v1858_v10 = vld [vmem:[%s1722_s27 + $0x1c] sm:$0xf] (%p2190_p4) }
  0x22   : > { %337 = vst [vmem:[%s314_s30] sm:$0xf] %v1856_v8  ;;  %339 = vst [vmem:[%s314_s30 + $0x4] sm:$0xf] %v1857_v9  ;;  %v1859_v11 = vld [vmem:[%s1722_s27 + $0x28] sm:$0xf] }
  0x23   : > { %341 = vst [vmem:[%s314_s30 + $0x8] sm:$0xf] %v1858_v10  ;;  %v1860_v12 = vld [vmem:[%s1722_s27 + $0x34] sm:$0xf]  ;;  %v1861_v13 = vld [vmem:[%s1722_s27 + $0x40] sm:$0xf] }
  0x24   : > { %343 = vst [vmem:[%s314_s30 + $0xc] sm:$0xf] %v1859_v11  ;;  %345 = vst [vmem:[%s314_s30 + $0x10] sm:$0xf] %v1860_v12  ;;  %v1862_v14 = vld [vmem:[%s1722_s27 + $0x4c] sm:$0xf] }
  0x25   : > { %347 = vst [vmem:[%s314_s30 + $0x14] sm:$0xf] %v1861_v13  ;;  %v1863_v15 = vld [vmem:[%s1722_s27 + $0x58] sm:$0xf]  ;;  %349 = vst [vmem:[%s314_s30 + $0x18] sm:$0xf] %v1862_v14 }
  0x26   : > { %351 = vst [vmem:[%s314_s30 + $0x1c] sm:$0xf] %v1863_v15 }
  0x27 PF: > { %391 = sbr.rel (!%p2190_p4) target bundleno = 49 (0x31), region = 102  ;;  %s393_s8 = sand.u32 (%p2190_p4), 1, %s2100_s20  }
  0x28   : > { %s1865_s9 = smul.u32 (%p2190_p4), 96, %s2108_s22  ;;  %s1864_s10 = sshll.u32 (%p2190_p4), %s393_s8, 5 }
  0x29   : > { %s395_s14 = scalar_lea.vmem (%p2190_p4), [#allocation4], %s1864_s10 }
  0x2a   : > { %s1729_s13 = scalar_lea.vmem (%p2190_p4), %s2602_s2, %s1865_s9 }
  0x2b   : > { %v1866_v16 = vld [vmem:[%s1729_s13 + $0x8] sm:$0xf] (%p2190_p4)  ;;  %v1867_v17 = vld [vmem:[%s1729_s13 + $0x14] sm:$0xf] (%p2190_p4)  ;;  %v1868_v18 = vld [vmem:[%s1729_s13 + $0x20] sm:$0xf] (%p2190_p4) }
  0x2c   : > { %418 = vst [vmem:[%s395_s14] sm:$0xf] %v1866_v16  ;;  %420 = vst [vmem:[%s395_s14 + $0x4] sm:$0xf] %v1867_v17  ;;  %v1869_v19 = vld [vmem:[%s1729_s13 + $0x2c] sm:$0xf] }
  0x2d   : > { %422 = vst [vmem:[%s395_s14 + $0x8] sm:$0xf] %v1868_v18  ;;  %v1870_v20 = vld [vmem:[%s1729_s13 + $0x38] sm:$0xf]  ;;  %v1871_v21 = vld [vmem:[%s1729_s13 + $0x44] sm:$0xf] }
  0x2e   : > { %424 = vst [vmem:[%s395_s14 + $0xc] sm:$0xf] %v1869_v19  ;;  %426 = vst [vmem:[%s395_s14 + $0x10] sm:$0xf] %v1870_v20  ;;  %v1872_v22 = vld [vmem:[%s1729_s13 + $0x50] sm:$0xf] }
  0x2f   : > { %428 = vst [vmem:[%s395_s14 + $0x14] sm:$0xf] %v1871_v21  ;;  %v1873_v23 = vld [vmem:[%s1729_s13 + $0x5c] sm:$0xf]  ;;  %430 = vst [vmem:[%s395_s14 + $0x18] sm:$0xf] %v1872_v22 }
  0x30   : > { %432 = vst [vmem:[%s395_s14 + $0x1c] sm:$0xf] %v1873_v23 }
  0x31 PF: > { %p1874_p11 = scmp.ge.s32.totalorder %s2112_s23, 1  ;;  %p477_p12 = scmp.lt.s32.totalorder %s2112_s23, 3 }
  0x33   : > { %p478_p13 = pnand %p1874_p11, %p477_p12 }
  0x34   : > { %s484_s28 = sand.u32 (!%p478_p13), 1, %s2096_s19   ;;  %p547_p0 = scmp.lt.s32.totalorder (!%p478_p13), %s2104_s21, 1 }
  0x35   : > { %481 = sbr.rel (%p478_p13) target bundleno = 1426 (0x592), region = 147  ;;  %s2239_s15 = sshll.u32 (!%p478_p13), %s484_s28, 5 }
  0x36   : > { %s2243_s16 = scalar_lea.vmem (!%p478_p13), [#allocation3], %s2239_s15  ;;  %s2258_s17 = scalar_lea.vmem (!%p478_p13), [#allocation2], %s2239_s15 }
  0x37   : > { %s2304_s8 = scalar_lea.vmem (!%p478_p13), [#allocation4], %s2239_s15  ;;  %s2421_s9 = scalar_lea.vmem (!%p478_p13), [#allocation5], %s2239_s15 }
  0x38   : > { %s1901_s10 = sshll.u32 (!%p478_p13), %s2104_s21, 9  ;;  %s1672_s11 = sshll.u32 (!%p478_p13), %s2421_s9, 4  ;;  %s2544_s11 = int_to_ptr.vmem [resolvable:$true] %s1672_s11 }
  0x39   : > { %s2542_s14 = scalar_lea.hbm (!%p478_p13), %s2605_s5, %s1901_s10  ;;  %s2548_s15 = scalar_lea.sflag (!%p478_p13), [#allocation6], %s484_s28 }
  0x3a   : > { %v2114_v24 = vmov 0.0   ;;  %vm609_vm0 = vcmask 1041409   ;;  %vm612_vm1 = vcmask 1042434   ;;  %vm615_vm2 = vcmask 1043459   ;;  %v570_v25 = vld [vmem:[%s2243_s16] sm:$0x1] }
  0x3b   : > { %1918 = vmatprep.subr.mxu0 %v2114_v24  ;;  %vm618_vm3 = vcmask 1044484   ;;  %1923 = vmatprep.subr.mxu1 %v2114_v24  ;;  %vm621_vm4 = vcmask 1045509   ;;  %vm624_vm5 = vcmask 1046534   ;;  %vm627_vm6 = vcmask 1047559   ;;  %v571_v26 = vld [vmem:[%s2243_s16 + $0x4] sm:$0x1] }
  0x3c   : > { %v572_v27 = vld [vmem:[%s2243_s16 + $0x8] sm:$0x1]  ;;  %vm2115_vm7 = vmmov 0   ;;  %v573_v28 = vld [vmem:[%s2243_s16 + $0xc] sm:$0x1]  ;;  %v637_v33 = vrot.slane %v571_v26, 7 }
  0x3d   : > { %1920 = vmatprep.mubr.msk.f32.mxu0 %vm2115_vm7, %v2114_v24  ;;  %1925 = vmatprep.mubr.msk.f32.mxu1 %vm2115_vm7, %v2114_v24  ;;  %v574_v29 = vld [vmem:[%s2243_s16 + $0x10] sm:$0x1]  ;;  %v575_v30 = vld [vmem:[%s2243_s16 + $0x14] sm:$0x1]  ;;  %v576_v31 = vld [vmem:[%s2243_s16 + $0x18] sm:$0x1] }
  0x3e   : > { %v577_v32 = vld [vmem:[%s2243_s16 + $0x1c] sm:$0x1]  ;;  %v639_v34 = vrot.slane %v572_v27, 6  ;;  %v641_v35 = vrot.slane %v573_v28, 5  ;;  %v643_v36 = vrot.slane %v574_v29, 4  ;;  %v645_v37 = vrot.slane %v575_v30, 3 }
  0x3f   : > { %vm651_vm8 = vcmask 64512   ;;  %v562_v38 = vld [vmem:[%s2258_s17] sm:$0x1]  ;;  %v638_v39 = vsel %vm609_vm0, %v637_v33, %v570_v25  ;;  %v647_v40 = vrot.slane %v576_v31, 2  ;;  %v649_v41 = vrot.slane %v577_v32, 1  ;;  %s2289_s24 = scalar_select %p547_p0, %s2104_s21, 1 }
  0x40   : > { %v563_v42 = vld [vmem:[%s2258_s17 + $0x4] sm:$0x1]  ;;  %v564_v43 = vld [vmem:[%s2258_s17 + $0x8] sm:$0x1]  ;;  %v640_v44 = vsel %vm612_vm1, %v639_v34, %v638_v39  ;;  %v565_v45 = vld [vmem:[%s2258_s17 + $0xc] sm:$0x1] }
  0x41   : > { %v566_v46 = vld [vmem:[%s2258_s17 + $0x10] sm:$0x1]  ;;  %v567_v47 = vld [vmem:[%s2258_s17 + $0x14] sm:$0x1]  ;;  %v642_v48 = vsel %vm615_vm2, %v641_v35, %v640_v44  ;;  %v568_v49 = vld [vmem:[%s2258_s17 + $0x18] sm:$0x1]  ;;  %s549_s30 = scalar_lea.vmem %s2603_s3, %s2289_s24 }
  0x42   : > { %v569_v50 = vld [vmem:[%s2258_s17 + $0x1c] sm:$0x1]  ;;  %v586_v51 = vmul.f32 0.35355338, %v562_v38  ;;  %v644_v52 = vsel %vm618_vm3, %v643_v36, %v642_v48  ;;  %v587_v53 = vmul.f32 0.35355338, %v563_v42 }
  0x43   : > { %v588_v54 = vmul.f32 0.35355338, %v564_v43  ;;  %v589_v55 = vmul.f32 0.35355338, %v565_v45  ;;  %v646_v56 = vsel %vm621_vm4, %v645_v37, %v644_v52  ;;  %v590_v57 = vmul.f32 0.35355338, %v566_v46 }
  0x44   : > { %v591_v58 = vmul.f32 0.35355338, %v567_v47  ;;  %v592_v59 = vmul.f32 0.35355338, %v568_v49  ;;  %v648_v60 = vsel %vm624_vm5, %v647_v40, %v646_v56  ;;  %v593_v61 = vmul.f32 0.35355338, %v569_v50 }
  0x45   : > { %v608_v62 = vrot.slane %v587_v53, 7  ;;  %v611_v63 = vrot.slane %v588_v54, 6  ;;  %v650_v0 = vsel %vm627_vm6, %v649_v41, %v648_v60  ;;  %v614_v1 = vrot.slane %v589_v55, 5  ;;  %v2295_v13 = vld [vmem:[%s549_s30] ss:$0 sm:$0xff]  ;;  %s2116_s21 = smov [#allocation5]  }
  0x46   : > { %v617_v2 = vrot.slane %v590_v57, 4  ;;  %1919 = vmatpush3.xpose.msk.msra.mxu0 %vm651_vm8, %v650_v0  ;;  %v620_v4 = vrot.slane %v591_v58, 3  ;;  %v623_v6 = vrot.slane %v592_v59, 2  ;;  %v626_v8 = vrot.slane %v593_v61, 1  ;;  %v579_v23 = vld [vmem:[%s2304_s8 + $0x4] sm:$0x1] }
  0x47   : > { %v610_v3 = vsel %vm609_vm0, %v608_v62, %v586_v51  ;;  %1933 = vmatprep.subr.mxu0 %v2114_v24  ;;  %v580_v25 = vld [vmem:[%s2304_s8 + $0x8] sm:$0x1]  ;;  %v749_v26 = vrot.slane %v579_v23, 7  ;;  %v578_v27 = vld [vmem:[%s2304_s8] sm:$0x1] }
  0x48   : > { %v613_v5 = vsel %vm612_vm1, %v611_v63, %v610_v3  ;;  %v581_v28 = vld [vmem:[%s2304_s8 + $0xc] sm:$0x1]  ;;  %v751_v29 = vrot.slane %v580_v25, 6  ;;  %v582_v30 = vld [vmem:[%s2304_s8 + $0x10] sm:$0x1] }
  0x49   : > { %v616_v7 = vsel %vm615_vm2, %v614_v1, %v613_v5  ;;  %v750_v31 = vsel %vm609_vm0, %v749_v26, %v578_v27  ;;  %v753_v32 = vrot.slane %v581_v28, 5  ;;  %v583_v33 = vld [vmem:[%s2304_s8 + $0x14] sm:$0x1]  ;;  %v755_v35 = vrot.slane %v582_v30, 4  ;;  %v584_v36 = vld [vmem:[%s2304_s8 + $0x18] sm:$0x1] }
  0x4a   : > { %v619_v9 = vsel %vm618_vm3, %v617_v2, %v616_v7  ;;  %v752_v34 = vsel %vm612_vm1, %v751_v29, %v750_v31  ;;  %v757_v38 = vrot.slane %v583_v33, 3  ;;  %v585_v39 = vld [vmem:[%s2304_s8 + $0x1c] sm:$0x1]  ;;  %v759_v41 = vrot.slane %v584_v36, 2  ;;  %v846_v46 = vld [vmem:[%s2243_s16 + $0x5] sm:$0x1] }
  0x4b   : > { %v622_v10 = vsel %vm621_vm4, %v620_v4, %v619_v9  ;;  %v754_v37 = vsel %vm615_vm2, %v753_v32, %v752_v34  ;;  %v761_v43 = vrot.slane %v585_v39, 1  ;;  %v847_v47 = vld [vmem:[%s2243_s16 + $0x9] sm:$0x1]  ;;  %v899_v48 = vrot.slane %v846_v46, 7  ;;  %v845_v49 = vld [vmem:[%s2243_s16 + $0x1] sm:$0x1] }
  0x4c   : > { %v625_v11 = vsel %vm624_vm5, %v623_v6, %v622_v10  ;;  %v756_v40 = vsel %vm618_vm3, %v755_v35, %v754_v37  ;;  %v848_v50 = vld [vmem:[%s2243_s16 + $0xd] sm:$0x1]  ;;  %v901_v51 = vrot.slane %v847_v47, 6  ;;  %v849_v53 = vld [vmem:[%s2243_s16 + $0x11] sm:$0x1] }
  0x4d   : > { %v628_v12 = vsel %vm627_vm6, %v626_v8, %v625_v11  ;;  %v758_v42 = vsel %vm621_vm4, %v757_v38, %v756_v40  ;;  %v900_v52 = vsel %vm609_vm0, %v899_v48, %v845_v49  ;;  %v903_v54 = vrot.slane %v848_v50, 5  ;;  %v838_v55 = vld [vmem:[%s2258_s17 + $0x5] sm:$0x1]  ;;  %v850_v56 = vld [vmem:[%s2243_s16 + $0x15] sm:$0x1] }
  0x4e   : > { %1921 = vmatmul.mubr.msk.f32.vlgmr.msra.gmra.mxu0 %vm651_vm8, %v628_v12  ;;  %v760_v44 = vsel %vm624_vm5, %v759_v41, %v758_v42  ;;  %v902_v57 = vsel %vm612_vm1, %v901_v51, %v900_v52  ;;  %v905_v58 = vrot.slane %v849_v53, 4  ;;  %v839_v59 = vld [vmem:[%s2258_s17 + $0x9] sm:$0x1]  ;;  %v851_v60 = vld [vmem:[%s2243_s16 + $0x19] sm:$0x1]  ;;  %v907_v2 = vrot.slane %v850_v56, 3 }
  0x4f   : > { %1935 = vmatprep.mubr.msk.f32.mxu0 %vm2115_vm7, %v2114_v24  ;;  %v762_v45 = vsel %vm627_vm6, %v761_v43, %v760_v44  ;;  %v852_v61 = vld [vmem:[%s2243_s16 + $0x1d] sm:$0x1]  ;;  %v837_v62 = vld [vmem:[%s2258_s17 + $0x1] sm:$0x1]  ;;  %v840_v63 = vld [vmem:[%s2258_s17 + $0xd] sm:$0x1]  ;;  %v904_v1 = vsel %vm615_vm2, %v903_v54, %v902_v57 }
  0x50   : > { %1924 = vmatpush3.msra.mxu1 %v762_v45  ;;  %v862_v0 = vmul.f32 0.35355338, %v838_v55  ;;  %v841_v3 = vld [vmem:[%s2258_s17 + $0x11] sm:$0x1]  ;;  %v842_v4 = vld [vmem:[%s2258_s17 + $0x15] sm:$0x1]  ;;  %v906_v11 = vsel %vm618_vm3, %v905_v58, %v904_v1 }
  0x51   : > { %1928 = vmatprep.subr.mxu1 %v2114_v24  ;;  %v843_v5 = vld [vmem:[%s2258_s17 + $0x19] sm:$0x1]  ;;  %v844_v6 = vld [vmem:[%s2258_s17 + $0x1d] sm:$0x1]  ;;  %v863_v7 = vmul.f32 0.35355338, %v839_v59  ;;  %v908_v27 = vsel %vm621_vm4, %v907_v2, %v906_v11 }
  0x52   : > { %v861_v8 = vmul.f32 0.35355338, %v837_v62  ;;  %v864_v9 = vmul.f32 0.35355338, %v840_v63  ;;  %v1108_v10 = vld [vmem:[%s2243_s16 + $0x6] sm:$0x1] }
  0x53   : > { %v2343_v12 = vmul.f32 0.35355338, %v841_v3  ;;  %v879_v23 = vrot.slane %v863_v7, 6  ;;  %v1109_v25 = vld [vmem:[%s2243_s16 + $0xa] sm:$0x1]  ;;  %v1161_v26 = vrot.slane %v1108_v10, 7 }
  0x54   : > { %v1099_v28 = vld [vmem:[%s2258_s17 + $0x2] sm:$0x1]  ;;  %v1101_v29 = vld [vmem:[%s2258_s17 + $0xa] sm:$0x1]  ;;  %v881_v32 = vrot.slane %v864_v9, 5  ;;  %v1163_v38 = vrot.slane %v1109_v25, 6 }
  0x55   : > { %v883_v33 = vrot.slane %v2343_v12, 4  ;;  %v1107_v34 = vld [vmem:[%s2243_s16 + $0x2] sm:$0x1]  ;;  %v1362_v35 = vld [vmem:[%s2258_s17 + $0x7] sm:$0x1] }
  0x56   : > { %v1110_v37 = vld [vmem:[%s2243_s16 + $0xe] sm:$0x1]  ;;  %v1370_v39 = vld [vmem:[%s2243_s16 + $0x7] sm:$0x1]  ;;  %v1123_v42 = vmul.f32 0.35355338, %v1099_v28  ;;  %v1162_v46 = vsel %vm609_vm0, %v1161_v26, %v1107_v34 }
  0x57   : > { %v1102_v41 = vld [vmem:[%s2258_s17 + $0xe] sm:$0x1]  ;;  %v1125_v43 = vmul.f32 0.35355338, %v1101_v29  ;;  %v1111_v45 = vld [vmem:[%s2243_s16 + $0x12] sm:$0x1] }
  0x58   : > { %v1363_v48 = vld [vmem:[%s2258_s17 + $0xb] sm:$0x1]  ;;  %v1386_v49 = vmul.f32 0.35355338, %v1362_v35  ;;  %v1165_v50 = vrot.slane %v1110_v37, 5  ;;  %v1423_v52 = vrot.slane %v1370_v39, 7 }
  0x59   : > { %v1371_v51 = vld [vmem:[%s2243_s16 + $0xb] sm:$0x1]  ;;  %v1361_v53 = vld [vmem:[%s2258_s17 + $0x3] sm:$0x1]  ;;  %v1103_v55 = vld [vmem:[%s2258_s17 + $0x12] sm:$0x1] }
  0x5a   : > { %v1126_v56 = vmul.f32 0.35355338, %v1102_v41  ;;  %v1369_v57 = vld [vmem:[%s2243_s16 + $0x3] sm:$0x1]  ;;  %v1112_v59 = vld [vmem:[%s2243_s16 + $0x16] sm:$0x1] }
  0x5b   : > { %v1364_v62 = vld [vmem:[%s2258_s17 + $0xf] sm:$0x1]  ;;  %v1387_v63 = vmul.f32 0.35355338, %v1363_v48  ;;  %v1425_v2 = vrot.slane %v1371_v51, 6  ;;  %v1424_v9 = vsel %vm609_vm0, %v1423_v52, %v1369_v57 }
  0x5c   : > { %v1372_v1 = vld [vmem:[%s2243_s16 + $0xf] sm:$0x1]  ;;  %v1385_v3 = vmul.f32 0.35355338, %v1361_v53  ;;  %v1104_v7 = vld [vmem:[%s2258_s17 + $0x16] sm:$0x1] }
  0x5d   : > { %v1143_v12 = vrot.slane %v1126_v56, 5  ;;  %v1403_v25 = vrot.slane %v1387_v63, 6  ;;  %v1105_v28 = vld [vmem:[%s2258_s17 + $0x1a] sm:$0x1]  ;;  %v1128_v29 = vmul.f32 0.35355338, %v1104_v7 }
  0x5e   : > { %v1366_v35 = vld [vmem:[%s2258_s17 + $0x17] sm:$0x1]  ;;  %v1114_v39 = vld [vmem:[%s2243_s16 + $0x1e] sm:$0x1] }
  0x5f   : > { %v1374_v41 = vld [vmem:[%s2243_s16 + $0x17] sm:$0x1]  ;;  %v1390_v51 = vmul.f32 0.35355338, %v1366_v35 }
  0x60   : > { %v1431_v56 = vrot.slane %v1374_v41, 3 }
 0x10e   : > { %v722_v14 = vpop.f32.mrf.mxu0 }
 0x10f   : > { %v723_v15 = vadd.f32 %v2295_v13, %v722_v14  ;;  %v877_v14 = vrot.slane %v862_v0, 7 }
 0x110   : > { %v1922_v16 = vpop.f32.mrf.mxu0 }
 0x111   : > { %v726_v17 = vsel %vm651_vm8, %v723_v15, -inf  ;;  %v878_v31 = vsel %vm609_vm0, %v877_v14, %v861_v8  ;;  %v1127_v8 = vmul.f32 0.35355338, %v1103_v55  ;;  %v1365_v14 = vld [vmem:[%s2258_s17 + $0x13] sm:$0x1] }
 0x112   : > { %727 = vmax.xlane.f32.xlu0 %v726_v17  ;;  %v909_v17 = vrot.slane %v851_v60, 2  ;;  %v880_v44 = vsel %vm612_vm1, %v879_v23, %v878_v31  ;;  %v1164_v60 = vsel %vm612_vm1, %v1163_v38, %v1162_v46  ;;  %v1427_v23 = vrot.slane %v1372_v1, 5  ;;  %v1375_v55 = vld [vmem:[%s2243_s16 + $0x1b] sm:$0x1]  ;;  %v1368_v1 = vld [vmem:[%s2258_s17 + $0x1f] sm:$0x1] }
 0x113   : > { %v882_v58 = vsel %vm615_vm2, %v881_v32, %v880_v44  ;;  %v1166_v11 = vsel %vm615_vm2, %v1165_v50, %v1164_v60  ;;  %v1145_v34 = vrot.slane %v1127_v8, 4  ;;  %v1389_v37 = vmul.f32 0.35355338, %v1365_v14 }
 0x114   : > { %v910_v40 = vsel %vm624_vm5, %v909_v17, %v908_v27  ;;  %v884_v17 = vsel %vm618_vm3, %v883_v33, %v882_v58  ;;  %v1169_v27 = vrot.slane %v1112_v59, 3  ;;  %v1129_v46 = vmul.f32 0.35355338, %v1105_v28 }
 0x115   : > { %v1147_v50 = vrot.slane %v1128_v29, 3  ;;  %v1407_v57 = vrot.slane %v1389_v37, 4  ;;  %v1173_v58 = vrot.slane %v1114_v39, 1  ;;  %v1433_v7 = vrot.slane %v1375_v55, 2  ;;  %v855_v55 = vld [vmem:[%s2304_s8 + $0x9] sm:$0x1] }
 0x116   : > { %v1409_v8 = vrot.slane %v1390_v51, 3 }
 0x19b   : > { %v728_v18 = vpop.xlane.xlu0 %727 }
 0x19c   : > { %v729_v19 = vsub.f32 %v723_v15, %v728_v18  ;;  %v1100_v15 = vld [vmem:[%s2258_s17 + $0x6] sm:$0x1]  ;;  %v911_v18 = vrot.slane %v852_v61, 1  ;;  %v1141_v61 = vrot.slane %v1125_v43, 6 }
 0x19d   : > { %v1124_v30 = vmul.f32 0.35355338, %v1100_v15  ;;  %v1388_v15 = vmul.f32 0.35355338, %v1364_v62 }
 0x19e   : > { %v730_v20 = vmul.f32 1.442695, %v729_v19  ;;  %v2348_v19 = vmul.f32 0.35355338, %v842_v4  ;;  %v2375_v54 = vsel %vm627_vm6, %v911_v18, %v910_v40  ;;  %v1401_v4 = vrot.slane %v1386_v49, 7 }
 0x19f   : > { %v1139_v47 = vrot.slane %v1124_v30, 7  ;;  %v1113_v18 = vld [vmem:[%s2243_s16 + $0x1a] sm:$0x1]  ;;  %v1426_v30 = vsel %vm612_vm1, %v1425_v2, %v1424_v9  ;;  %v1405_v43 = vrot.slane %v1388_v15, 5 }
 0x1a0   : > { %2020 = vpow2.f32 %v730_v20  ;;  %v2350_v20 = vmul.f32 0.35355338, %v843_v5  ;;  %v885_v36 = vrot.slane %v2348_v19, 3  ;;  %v1402_v31 = vsel %vm609_vm0, %v1401_v4, %v1385_v3 }
 0x1a1   : > { %v1140_v0 = vsel %vm609_vm0, %v1139_v47, %v1123_v42  ;;  %v1404_v47 = vsel %vm612_vm1, %v1403_v25, %v1402_v31  ;;  %v1171_v49 = vrot.slane %v1113_v18, 2 }
 0x1a2   : > { %v887_v5 = vrot.slane %v2350_v20, 2  ;;  %v1142_v19 = vsel %vm612_vm1, %v1141_v61, %v1140_v0  ;;  %v1373_v20 = vld [vmem:[%s2243_s16 + $0x13] sm:$0x1]  ;;  %v886_v38 = vsel %vm621_vm4, %v885_v36, %v884_v17  ;;  %v1367_v36 = vld [vmem:[%s2258_s17 + $0x1b] sm:$0x1]  ;;  %v1406_v61 = vsel %vm615_vm2, %v1405_v43, %v1404_v47 }
 0x1a3   : > { %v1144_v40 = vsel %vm615_vm2, %v1143_v12, %v1142_v19  ;;  %v1429_v42 = vrot.slane %v1373_v20, 4  ;;  %v1149_v0 = vrot.slane %v1129_v46, 2  ;;  %v1391_v2 = vmul.f32 0.35355338, %v1367_v36 }
 0x1a4   : > { %v1146_v53 = vsel %vm618_vm3, %v1145_v34, %v1144_v40  ;;  %v888_v63 = vsel %vm624_vm5, %v887_v5, %v886_v38  ;;  %v1408_v5 = vsel %vm618_vm3, %v1407_v57, %v1406_v61  ;;  %v1392_v12 = vmul.f32 0.35355338, %v1368_v1  ;;  %v853_v57 = vld [vmem:[%s2304_s8 + $0x1] sm:$0x1] }
 0x1a5   : > { %v1148_v4 = vsel %vm621_vm4, %v1147_v50, %v1146_v53  ;;  %v1411_v18 = vrot.slane %v1391_v2, 2  ;;  %v854_v53 = vld [vmem:[%s2304_s8 + $0x5] sm:$0x1]  ;;  %v859_v2 = vld [vmem:[%s2304_s8 + $0x19] sm:$0x1] }
 0x1a6   : > { %v1150_v15 = vsel %vm624_vm5, %v1149_v0, %v1148_v4 }
 0x1ad   : > { %v2299_v21 = vpop.eup %2020 }
 0x1ae   : > { %v732_v22 = vsel %vm651_vm8, %v2299_v21, 0.0 }
 0x1af   : > { %733 = vadd.xlane.f32.xlu0 %v732_v22  ;;  %v2353_v22 = vmul.f32 0.35355338, %v844_v6  ;;  %v1167_v6 = vrot.slane %v1111_v45, 4  ;;  %v1106_v45 = vld [vmem:[%s2258_s17 + $0x1e] sm:$0x1]  ;;  %s2040_s17 = sshll.u32 %s2116_s21, 4  ;;  %s2041_s17 = int_to_ptr.vmem [resolvable:$false] %s2040_s17 }
 0x1b0   : > { %v1130_v59 = vmul.f32 0.35355338, %v1106_v45  ;;  %s2042_s25 = scalar_lea.vmem %s2041_s17, 1024  ;;  %p2043_p4 = scmp.lt.s32.totalorder %s2544_s11, %s2041_s17 }
 0x1b1   : > { %v889_v10 = vrot.slane %v2353_v22, 1  ;;  %v1168_v33 = vsel %vm618_vm3, %v1167_v6, %v1166_v11  ;;  %v1376_v6 = vld [vmem:[%s2243_s16 + $0x1f] sm:$0x1]  ;;  %s2036_s16 = scalar_lea.vmem %s2544_s11, 512 }
 0x1b2   : > { %v1170_v48 = vsel %vm621_vm4, %v1169_v27, %v1168_v33  ;;  %v1151_v11 = vrot.slane %v1130_v59, 1  ;;  %v1435_v17 = vrot.slane %v1376_v6, 1  ;;  %v1013_v59 = vrot.slane %v855_v55, 6  ;;  %v860_v6 = vld [vmem:[%s2304_s8 + $0x1d] sm:$0x1]  ;;  %p2037_p1 = scmp.ne.s32.totalorder %s2544_s11, %s2036_s16  ;;  %p2044_p6 = scmp.lt.s32.totalorder %s2042_s25, %s2036_s16 }
 0x1b3   : > { %v1172_v3 = vsel %vm624_vm5, %v1171_v49, %v1170_v48  ;;  %v890_v9 = vsel %vm627_vm6, %v889_v10, %v888_v63  ;;  %v1413_v10 = vrot.slane %v1392_v12, 1  ;;  %v858_v63 = vld [vmem:[%s2304_s8 + $0x15] sm:$0x1]  ;;  %v1116_v12 = vld [vmem:[%s2304_s8 + $0x6] sm:$0x1] }
 0x1b4   : > { %v1174_v14 = vsel %vm627_vm6, %v1173_v58, %v1172_v3  ;;  %v1152_v22 = vsel %vm627_vm6, %v1151_v11, %v1150_v15  ;;  %v856_v58 = vld [vmem:[%s2304_s8 + $0xd] sm:$0x1]  ;;  %v1019_v4 = vrot.slane %v858_v63, 3  ;;  %v1273_v15 = vrot.slane %v1116_v12, 7  ;;  %p2038_p2 = pnand %p2037_p1, %p2194_p5  ;;  %p2045_p7 = por %p2044_p6, %p2043_p4 }
 0x1b6   : > { %p2039_p3 = pneg %p2038_p2 }
 0x1b8   : > { %p2046_p8 = pnand %p2045_p7, %p2039_p3 }
 0x238   : > { %v2346_v16 = vpop.xlane.xlu0 %733 }
 0x239   : > { %2022 = vrcp.f32 %v2346_v16 }
 0x246   : > { %v2023_v26 = vpop.eup %2022 }
 0x247   : > { %v736_v32 = vmul.f32 %v2023_v26, %v2346_v16  ;;  %v1428_v16 = vsel %vm615_vm2, %v1427_v23, %v1426_v30 }
 0x248   : > { %v1430_v60 = vsel %vm618_vm3, %v1429_v42, %v1428_v16 }
 0x249   : > { %v737_v44 = vsub.f32 2.0, %v736_v32 }
 0x24b   : > { %v738_v52 = vmul.f32 %v2023_v26, %v737_v44 }
 0x24d   : > { %v739_v62 = vmul.f32 %v2299_v21, %v738_v52  ;;  %v1432_v21 = vsel %vm621_vm4, %v1431_v56, %v1430_v60  ;;  %v1011_v56 = vrot.slane %v854_v53, 7  ;;  %v857_v60 = vld [vmem:[%s2304_s8 + $0x11] sm:$0x1]  ;;  %v1383_v53 = vld [vmem:[%s2304_s8 + $0x1b] sm:$0x1] }
 0x24e   : > { %v1434_v19 = vsel %vm624_vm5, %v1433_v7, %v1432_v21  ;;  %v1017_v1 = vrot.slane %v857_v60, 4 }
 0x24f   : > { %740 = vst.msk [vmem:[%s2421_s9] sm:$0xff] %vm651_vm8, %v739_v62  ;;  %1926 = vmatmul.mubr.msk.f32.vlgmr.msra.gmra.mxu1 %vm651_vm8, %v739_v62  ;;  %v1436_v20 = vsel %vm627_vm6, %v1435_v17, %v1434_v19  ;;  %v1012_v61 = vsel %vm609_vm0, %v1011_v56, %v853_v57  ;;  %v1015_v62 = vrot.slane %v856_v58, 5  ;;  %v1378_v19 = vld [vmem:[%s2304_s8 + $0x7] sm:$0x1] }
 0x250   : > { %1929 = vmatpush3.xpose.msk.msra.mxu1 %vm651_vm8, %v2375_v54  ;;  %1930 = vmatprep.mubr.msk.f32.mxu1 %vm2115_vm7, %v2114_v24  ;;  %v1410_v54 = vsel %vm621_vm4, %v1409_v8, %v1408_v5  ;;  %v1014_v0 = vsel %vm612_vm1, %v1013_v59, %v1012_v61  ;;  %v1021_v8 = vrot.slane %v859_v2, 2  ;;  %v1023_v5 = vrot.slane %v860_v6, 1  ;;  %v1384_v61 = vld [vmem:[%s2304_s8 + $0x1f] sm:$0x1] }
 0x251   : > { %1938 = vmatprep.subr.mxu1 %v2114_v24  ;;  %v1412_v23 = vsel %vm624_vm5, %v1411_v18, %v1410_v54  ;;  %v1016_v3 = vsel %vm615_vm2, %v1015_v62, %v1014_v0  ;;  %v1115_v18 = vld [vmem:[%s2304_s8 + $0x2] sm:$0x1]  ;;  %v1118_v54 = vld [vmem:[%s2304_s8 + $0xe] sm:$0x1]  ;;  %v1545_v62 = vrot.slane %v1383_v53, 2  ;;  %v1547_v6 = vrot.slane %v1384_v61, 1 }
 0x252   : > { %v1414_v25 = vsel %vm627_vm6, %v1413_v10, %v1412_v23  ;;  %v1018_v7 = vsel %vm618_vm3, %v1017_v1, %v1016_v3  ;;  %v1274_v10 = vsel %vm609_vm0, %v1273_v15, %v1115_v18  ;;  %v1535_v23 = vrot.slane %v1378_v19, 7 }
 0x253   : > { %1931 = vmatmul.mubr.msk.f32.vlgmr.msra.gmra.mxu1 %vm651_vm8, %v890_v9  ;;  %v1020_v21 = vsel %vm621_vm4, %v1019_v4, %v1018_v7 }
 0x254   : > { %1939 = vmatpush3.xpose.msk.msra.mxu1 %vm651_vm8, %v1174_v14  ;;  %1940 = vmatprep.mubr.msk.f32.mxu1 %vm2115_vm7, %v2114_v24  ;;  %v1022_v9 = vsel %vm624_vm5, %v1021_v8, %v1020_v21  ;;  %v1117_v14 = vld [vmem:[%s2304_s8 + $0xa] sm:$0x1] }
 0x255   : > { %1948 = vmatprep.subr.mxu1 %v2114_v24  ;;  %v1024_v11 = vsel %vm627_vm6, %v1023_v5, %v1022_v9 }
 0x256   : > { %1934 = vmatpush3.msra.mxu0 %v1024_v11 }
 0x257   : > { %1941 = vmatmul.mubr.msk.f32.vlgmr.msra.gmra.mxu1 %vm651_vm8, %v1152_v22  ;;  %1943 = vmatprep.subr.mxu0 %v2114_v24  ;;  %v1275_v22 = vrot.slane %v1117_v14, 6 }
 0x258   : > { %1949 = vmatpush3.xpose.msk.msra.mxu1 %vm651_vm8, %v1436_v20  ;;  %1950 = vmatprep.mubr.msk.f32.mxu1 %vm2115_vm7, %v2114_v24  ;;  %v1379_v20 = vld [vmem:[%s2304_s8 + $0xb] sm:$0x1] }
 0x25b   : > { %1951 = vmatmul.mubr.msk.f32.vlgmr.msra.gmra.mxu1 %vm651_vm8, %v1414_v25 }
 0x30f   : > { %v2454_v26 = vpop.f32.mrf.mxu1 }
 0x311   : > { %v1927_v27 = vpop.f32.mrf.mxu1 }
 0x312   : > { %v1377_v27 = vld [vmem:[%s2304_s8 + $0x3] sm:$0x1] }
 0x313   : > { %v983_v28 = vpop.f32.mrf.mxu1 }
 0x314   : > { %v984_v29 = vadd.f32 %v2295_v13, %v983_v28  ;;  %v1119_v28 = vld [vmem:[%s2304_s8 + $0x12] sm:$0x1] }
 0x315   : > { %v1932_v30 = vpop.f32.mrf.mxu1 }
 0x316   : > { %v987_v31 = vsel %vm651_vm8, %v984_v29, -inf  ;;  %v1276_v30 = vsel %vm612_vm1, %v1275_v22, %v1274_v10 }
 0x317   : > { %988 = vmax.xlane.f32.xlu1 %v987_v31  ;;  %v1245_v32 = vpop.f32.mrf.mxu1  ;;  %v1380_v31 = vld [vmem:[%s2304_s8 + $0xf] sm:$0x1] }
 0x318   : > { %v1246_v33 = vadd.f32 %v2295_v13, %v1245_v32  ;;  %v1537_v32 = vrot.slane %v1379_v20, 6 }
 0x319   : > { %v1942_v34 = vpop.f32.mrf.mxu1 }
 0x31a   : > { %v1249_v35 = vsel %vm651_vm8, %v1246_v33, -inf }
 0x31b   : > { %1250 = vmax.xlane.f32.xlu1 %v1249_v35  ;;  %v1507_v37 = vpop.f32.mrf.mxu1  ;;  %v1120_v35 = vld [vmem:[%s2304_s8 + $0x16] sm:$0x1] }
 0x31c   : > { %v1508_v38 = vadd.f32 %v2295_v13, %v1507_v37  ;;  %v1279_v37 = vrot.slane %v1119_v28, 4 }
 0x31d   : > { %v1952_v39 = vpop.f32.mrf.mxu1 }
 0x31e   : > { %v1511_v40 = vsel %vm651_vm8, %v1508_v38, -inf  ;;  %v1381_v39 = vld [vmem:[%s2304_s8 + $0x13] sm:$0x1] }
 0x31f   : > { %1512 = vmax.xlane.f32.xlu0 %v1511_v40  ;;  %v1539_v40 = vrot.slane %v1380_v31, 5 }
 0x3a0   : > { %v989_v41 = vpop.xlane.xlu1 %988 }
 0x3a1   : > { %v990_v42 = vsub.f32 %v984_v29, %v989_v41  ;;  %v1277_v29 = vrot.slane %v1118_v54, 5 }
 0x3a3   : > { %v991_v43 = vmul.f32 1.442695, %v990_v42  ;;  %v1121_v42 = vld [vmem:[%s2304_s8 + $0x1a] sm:$0x1] }
 0x3a4   : > { %v1251_v44 = vpop.xlane.xlu1 %1250 }
 0x3a5   : > { %2024 = vpow2.f32 %v991_v43  ;;  %v1252_v45 = vsub.f32 %v1246_v33, %v1251_v44  ;;  %v1536_v33 = vsel %vm609_vm0, %v1535_v23, %v1377_v27  ;;  %v1281_v43 = vrot.slane %v1120_v35, 3 }
 0x3a6   : > { %v1538_v41 = vsel %vm612_vm1, %v1537_v32, %v1536_v33 }
 0x3a7   : > { %v1253_v46 = vmul.f32 1.442695, %v1252_v45  ;;  %v1382_v45 = vld [vmem:[%s2304_s8 + $0x17] sm:$0x1] }
 0x3a8   : > { %v1513_v16 = vpop.xlane.xlu0 %1512  ;;  %v1543_v55 = vrot.slane %v1382_v45, 3 }
 0x3a9   : > { %2026 = vpow2.f32 %v1253_v46  ;;  %v1514_v47 = vsub.f32 %v1508_v38, %v1513_v16  ;;  %v1278_v38 = vsel %vm615_vm2, %v1277_v29, %v1276_v30  ;;  %v1541_v46 = vrot.slane %v1381_v39, 4 }
 0x3aa   : > { %v1280_v44 = vsel %vm618_vm3, %v1279_v37, %v1278_v38  ;;  %v1540_v16 = vsel %vm615_vm2, %v1539_v40, %v1538_v41 }
 0x3ab   : > { %v1515_v48 = vmul.f32 1.442695, %v1514_v47  ;;  %v1542_v56 = vsel %vm618_vm3, %v1541_v46, %v1540_v16 }
 0x3ac   : > { %v1544_v1 = vsel %vm621_vm4, %v1543_v55, %v1542_v56 }
 0x3ad   : > { %2028 = vpow2.f32 %v1515_v48  ;;  %v1122_v48 = vld [vmem:[%s2304_s8 + $0x1e] sm:$0x1]  ;;  %v1546_v8 = vsel %vm624_vm5, %v1545_v62, %v1544_v1 }
 0x3ae   : > { %v1285_v58 = vrot.slane %v1122_v48, 1  ;;  %v1548_v11 = vsel %vm627_vm6, %v1547_v6, %v1546_v8 }
 0x3b2   : > { %v2462_v13 = vpop.eup %2024 }
 0x3b3   : > { %v993_v49 = vsel %vm651_vm8, %v2462_v13, 0.0 }
 0x3b4   : > { %994 = vadd.xlane.f32.xlu1 %v993_v49  ;;  %v1283_v49 = vrot.slane %v1121_v42, 2 }
 0x3b6   : > { %v2466_v50 = vpop.eup %2026 }
 0x3b7   : > { %v1255_v36 = vsel %vm651_vm8, %v2466_v50, 0.0 }
 0x3b8   : > { %1256 = vadd.xlane.f32.xlu0 %v1255_v36 }
 0x3ba   : > { %v2470_v51 = vpop.eup %2028 }
 0x3bb   : > { %v1517_v52 = vsel %vm651_vm8, %v2470_v51, 0.0 }
 0x3bc   : > { %1518 = vadd.xlane.f32.xlu1 %v1517_v52  ;;  %v1282_v52 = vsel %vm621_vm4, %v1281_v43, %v1280_v44 }
 0x3bd   : > { %v1284_v60 = vsel %vm624_vm5, %v1283_v49, %v1282_v52 }
 0x3be   : > { %v1286_v4 = vsel %vm627_vm6, %v1285_v58, %v1284_v60 }
 0x43d   : > { %v995_v17 = vpop.xlane.xlu1 %994 }
 0x43e   : > { %2030 = vrcp.f32 %v995_v17 }
 0x441   : > { %v1257_v25 = vpop.xlane.xlu0 %1256 }
 0x442   : > { %2032 = vrcp.f32 %v1257_v25 }
 0x445   : > { %v1519_v34 = vpop.xlane.xlu1 %1518 }
 0x446   : > { %2034 = vrcp.f32 %v1519_v34 }
 0x44b   : > { %v2031_v47 = vpop.eup %2030 }
 0x44c   : > { %v997_v36 = vmul.f32 %v2031_v47, %v995_v17 }
 0x44e   : > { %v998_v57 = vsub.f32 2.0, %v997_v36 }
 0x44f   : > { %v2033_v59 = vpop.eup %2032 }
 0x450   : > { %v999_v63 = vmul.f32 %v2031_v47, %v998_v57  ;;  %v1259_v0 = vmul.f32 %v2033_v59, %v1257_v25 }
 0x452   : > { %v1000_v2 = vmul.f32 %v2462_v13, %v999_v63  ;;  %v1260_v3 = vsub.f32 2.0, %v1259_v0 }
 0x453   : > { %v2035_v7 = vpop.eup %2034 }
 0x454   : > { %1886 = vst.msk [vmem:[%s2421_s9 + $0x8] sm:$0xff] %vm651_vm8, %v1000_v2  ;;  %v1261_v21 = vmul.f32 %v2033_v59, %v1260_v3  ;;  %v1521_v5 = vmul.f32 %v2035_v7, %v1519_v34  ;;  %1936 = vmatmul.mubr.msk.f32.vlgmr.msra.gmra.mxu0 %vm651_vm8, %v1000_v2 }
 0x455   : > { %1944 = vmatpush3.msra.mxu0 %v1286_v4  ;;  %1945 = vmatprep.mubr.msk.f32.mxu0 %vm2115_vm7, %v2114_v24 }
 0x456   : > { %v1262_v13 = vmul.f32 %v2466_v50, %v1261_v21  ;;  %v1522_v9 = vsub.f32 2.0, %v1521_v5  ;;  %1953 = vmatprep.subr.mxu0 %v2114_v24 }
 0x458   : > { %1890 = vst.msk [vmem:[%s2421_s9 + $0x10] sm:$0xff] %vm651_vm8, %v1262_v13  ;;  %v1523_v12 = vmul.f32 %v2035_v7, %v1522_v9  ;;  %1946 = vmatmul.mubr.msk.f32.vlgmr.msra.gmra.mxu0 %vm651_vm8, %v1262_v13 }
 0x459   : > { %1954 = vmatpush3.msra.mxu0 %v1548_v11  ;;  %1955 = vmatprep.mubr.msk.f32.mxu0 %vm2115_vm7, %v2114_v24 }
 0x45a   : > { %v1524_v14 = vmul.f32 %v2470_v51, %v1523_v12 }
 0x45c   : > { %1894 = vst.msk [vmem:[%s2421_s9 + $0x18] sm:$0xff] %vm651_vm8, %v1524_v14  ;;  %1956 = vmatmul.mubr.msk.f32.vlgmr.msra.gmra.mxu0 %vm651_vm8, %v1524_v14 }
 0x45d   : > { %2049 = shalt.err (!%p2046_p8)
}
 0x45e   : > { %s2050_s28 = scalar_lea.hbm %s2542_s14, 512  ;;  %s2054_s8 = scalar_lea.hbm %s2605_s5, 1024 }
 0x45f   : > { %p2051_p11 = scmp.ne.s32.totalorder %s2542_s14, %s2050_s28  ;;  %p2055_p0 = scmp.lt.s32.totalorder %s2542_s14, %s2605_s5 }
 0x460   : > { %p2056_p1 = scmp.lt.s32.totalorder %s2054_s8, %s2050_s28 }
 0x461   : > { %p2052_p12 = pnand %p2051_p11, %p2194_p5 }
 0x462   : > { %p2057_p2 = por %p2056_p1, %p2055_p0 }
 0x463   : > { %p2053_p13 = pneg %p2052_p12 }
 0x465   : > { %p2058_p3 = pnand %p2057_p2, %p2053_p13 }
 0x467   : > { %2061 = shalt.err (!%p2058_p3)
}
 0x468   : > { %s2117_s12 = smov 128   ;;  %s2118_s13 = smov 8   ;;  %vm1636_vm9 = vcmask 130048   ;;  %vm1638_vm10 = vcmask 195584   ;;  %vm1640_vm11 = vcmask 261120  }
 0x469   : > { %1959 = dma.vmem_to_hbm [thread:$0]  (%p2194_p5), %s2544_s11, 512, %s2542_s14, %s2548_s15, %s2117_s12, %s2117_s12, %s2118_s13  }
 0x46a   : > { %s2119_s16 = smov 16   ;;  %s2120_s21 = smov 24  }
 0x46b   : > { %s1879_s17 = sshll.u32 %s2289_s24, 3 }
 0x46c   : > { %s559_s14 = scalar_lea.vmem %s2604_s4, %s1879_s17 }
 0x514   : > { %v1095_v24 = vpop.f32.mrf.mxu0 }
 0x515   : > { %1624 = vrot.lane.b32.xlu0 %v1095_v24, %s2118_s13 }
 0x516   : > { %v1937_v50 = vpop.f32.mrf.mxu0 }
 0x518   : > { %v1357_v51 = vpop.f32.mrf.mxu0 }
 0x519   : > { %1628 = vrot.lane.b32.xlu1 %v1357_v51, %s2119_s16 }
 0x51a   : > { %v1947_v15 = vpop.f32.mrf.mxu0 }
 0x51c   : > { %v1619_v17 = vpop.f32.mrf.mxu0 }
 0x51d   : > { %1632 = vrot.lane.b32.xlu1 %v1619_v17, %s2120_s21 }
 0x51e   : > { %v1957_v18 = vpop.f32.mrf.mxu0 }
 0x587   : > { %v1625_v19 = vpop.permute.xlu0 %1624 }
 0x588   : > { %v1635_v22 = vsel %vm651_vm8, %v2454_v26, %v1625_v19 }
 0x58b   : > { %v1629_v54 = vpop.permute.xlu1 %1628 }
 0x58c   : > { %v1637_v10 = vsel %vm1636_vm9, %v1635_v22, %v1629_v54 }
 0x58f   : > { %v1633_v20 = vpop.permute.xlu1 %1632 }
 0x590   : > { %v1639_v23 = vsel %vm1638_vm10, %v1637_v10, %v1633_v20 }
 0x591   : > { %1641 = vst.msk [vmem:[%s559_s14] sm:$0xff] %vm1640_vm11, %v1639_v23 }
 0x592 PF: > { %s1700_s15 = sand.u32 1, %s2092_s18   ;;  %p1962_p5 = pnand %p1851_p10, %p2205_p9 }
 0x593   : > { %s1701_s24 = scalar_lea.sflag [#allocation6], %s1700_s15 }
 0x594   : > { %p1963_p4 = pneg %p1962_p5 }
 0x596   : > { %2087 = dma.done.wait (%p1963_p4), %s1701_s24, 512  }
 0x597   : > { %2089 = vsyncadd (%p1963_p4), %s1701_s24, 4294966784  ;;  %s19_s23 = sadd.s32 1, %s2112_s23   ;;  %s2609_s18 = smov %s2096_s19 }
 0x598   : > { %p16_p6 = scmp.ge.s32.totalorder %s19_s23, 4   ;;  %s2610_s19 = smov %s2100_s20 }
 0x599   : > { %s2611_s20 = smov %s2203_s6  ;;  %s2612_s21 = smov %s2108_s22 }
 0x59a   : > { %s2613_s22 = smov %s2615_s26  ;;  %18 = sbr.rel (!%p16_p6) target bundleno = 4 (0x4), region = 233 }
 0x59f   :  { %1706 = vsyncpa [#allocation6], 1 }
 0x5a0   :  { %1708 = vsyncpa [#allocation6 + $0x1], 1 }

</bundles_post_ra>
